<compile_context>
chip_gen: v5e
topology: v5e:2x2
jax: 0.10.0
libtpu: 0.0.40
codegen_flags: <defaults>
</compile_context>

<pallas_src>
import jax
import jax.numpy as jnp
from jax import lax
from jax.experimental import pallas as pl
from jax.experimental.pallas import tpu as pltpu

H_DIM1 = 100
H_DIM2 = 100
O_DIM = 1
LN_EPS = 1e-5            # PyTorch nn.LayerNorm default
LEAKY_SLOPE = 0.01       # PyTorch nn.LeakyReLU default
_N_PACKED_ROWS = 8       # b1, g1, be1, b2, g2, be2, wop^T, bop -> 8 sublanes


def _leaky_relu(x):
    return jnp.where(x > 0, x, LEAKY_SLOPE * x)


def _layer_norm(x, gamma, beta):
    mean = jnp.mean(x, axis=-1, keepdims=True)
    var = jnp.mean((x - mean) ** 2, axis=-1, keepdims=True)
    return (x - mean) * lax.rsqrt(var + LN_EPS) * gamma + beta


# --------------------------------------------------------------------------
# Kernel
# --------------------------------------------------------------------------
def rt_nw_kernel(x_ref, w1_ref, w2_ref, vec_ref, out_ref):
    # Blocks for this edge tile (E = e_tile edges per grid step).
    x = x_ref[...]           # (E, dtpt, ip_dim)  bf16, edge-major
    w1 = w1_ref[...]         # (E, ip_dim, H1)    bf16
    w2 = w2_ref[...]         # (E, H1, H2)        bf16
    vec = vec_ref[...]       # (E, 8, H)          f32 packed small vectors

    b1, g1, be1 = vec[:, 0:1, :], vec[:, 1:2, :], vec[:, 2:3, :]
    b2, g2, be2 = vec[:, 3:4, :], vec[:, 4:5, :], vec[:, 5:6, :]
    wop_t = vec[:, 6:7, :]           # (E, 1, H2)  transposed output weight
    bop = vec[:, 7:8, 0]             # (E, 1)

    # Layer 1: Linear -> LeakyReLU -> LayerNorm   (Dropout = identity, eval)
    h = jnp.einsum('edi,eih->edh', x, w1,
                   preferred_element_type=jnp.float32) + b1
    h = _leaky_relu(h)
    h = _layer_norm(h, g1, be1)

    # Layer 2: Linear -> LeakyReLU -> LayerNorm   (Dropout = identity, eval)
    h = jnp.einsum('edh,ehk->edk', h.astype(jnp.bfloat16), w2,
                   preferred_element_type=jnp.float32) + b2
    h = _leaky_relu(h)
    h = _layer_norm(h, g2, be2)

    # Output head (H2 -> 1): VPU multiply + lane reduction, not an N=1 matmul.
    out = jnp.sum(h * wop_t, axis=-1) + bop       # (E, dtpt)
    out_ref[...] = out.astype(out_ref.dtype)


# --------------------------------------------------------------------------
# Tiling / VMEM planning
# --------------------------------------------------------------------------
def _rup(n, m):
    return ((n + m - 1) // m) * m


def _vmem_limit_bytes():
    """3/4 of physical VMEM: 96 MiB on v5e/v6e (128 MiB), 48 MiB on v7x (64)."""
    cap = 64 * 1024 * 1024   # conservative default (v7x) if the probe fails
    try:
        info = pltpu.get_tpu_info()
        for attr in ("vmem_capacity_bytes", "vmem_bytes", "vmem_size_bytes"):
            v = getattr(info, attr, None)
            if v:
                cap = int(v)
                break
    except Exception:
        pass
    return (cap * 3) // 4


def _plan_edge_tiling(num_edges, dtpt, ip_dim, vmem_limit, max_tile=256):
    """Return (e_tile, e_pad).

    e_tile: multiple of 8, VMEM-budgeted from *padded* VMEM footprints
            (do NOT pad H in HBM — blocks span the full trailing dims, so the
            HBM reads are already contiguous; padding only happens in VMEM).
    e_pad : multiple of e_tile; wrapper zero-pads the edge axis up to it and
            drops the padded rows of the output (fixes the old full-extent
            fallback which lost pipelining / blew VMEM for awkward E).
    """
    h_lanes = _rup(H_DIM1, 128)
    ip_lanes = _rup(ip_dim, 128)
    # Per-edge VMEM bytes of the pipelined (double-buffered) streams.
    stream = (
        _rup(ip_dim, 16) * h_lanes * 2        # w1  (bf16: 16-row sublane pack)
        + _rup(H_DIM1, 16) * h_lanes * 2      # w2  (bf16)  ~28 KB/edge padded
        + _N_PACKED_ROWS * h_lanes * 4        # packed vecs (f32)
        + _rup(dtpt, 16) * ip_lanes * 2       # x   (bf16)
        + _rup(dtpt, 128) * 4                 # out (f32, dtpt on lanes)
    )
    # Live f32 intermediates inside the body (h, LN temps) — not buffered.
    scratch = 4 * dtpt * h_lanes * 4
    per_edge = 2 * stream + scratch
    budget = int(vmem_limit * 0.8)            # headroom for compiler scratch

    e_tile = min(max_tile, max(8, budget // max(per_edge, 1)))
    e_tile = max(8, (e_tile // 8) * 8)

    if num_edges <= e_tile:
        e_tile = _rup(num_edges, 8)
        return e_tile, e_tile

    # Prefer a divisor of num_edges (no padding copy) if one is within 2x of
    # the budgeted tile; otherwise zero-pad the edge axis.
    for t in range(e_tile, max(8, e_tile // 2) - 1, -8):
        if num_edges % t == 0:
            return t, num_edges
    return e_tile, _rup(num_edges, e_tile)


# --------------------------------------------------------------------------
# Parameter prep (hoisted, one-time) and forward
# --------------------------------------------------------------------------
def prepare_params(params):
    """One-time prep: cast w1/w2 to bf16 (halves the dominant HBM stream) and
    pack the 7 tiny per-edge vectors + transposed output head into a single
    (E, 8, H) f32 slab -> one DMA stream instead of 7."""
    (w1, b1, g1, be1, w2, b2, g2, be2, wop, bop) = params
    H = H_DIM1
    wop_t = jnp.transpose(wop, (0, 2, 1))                      # (E, 1, H)
    bop_row = jnp.pad(bop, ((0, 0), (0, 0), (0, H - O_DIM)))   # (E, 1, H)
    packed = jnp.concatenate(
        [b1, g1, be1, b2, g2, be2, wop_t, bop_row], axis=1
    ).astype(jnp.float32)                                      # (E, 8, H)
    return (w1.astype(jnp.bfloat16), w2.astype(jnp.bfloat16), packed)


def rt_nw_forward(x, prepped):
    """x: (dtpt, num_edges, ip_dim) f32 -> (dtpt, num_edges, 1) f32."""
    dtpt, num_edges, ip_dim = x.shape
    w1, w2, packed = prepped
    assert H_DIM1 == H_DIM2
    H = H_DIM1

    vmem_limit = _vmem_limit_bytes()
    e_tile, e_pad = _plan_edge_tiling(num_edges, dtpt, ip_dim, vmem_limit)

    # Edge-major bf16 view of x.  x is the smallest HBM stream; the XLA-side
    # transpose keeps the in-kernel einsum in canonical leading-batch form.
    x_e = jnp.transpose(x, (1, 0, 2)).astype(jnp.bfloat16)     # (E, dtpt, ip)

    if e_pad != num_edges:
        pad = e_pad - num_edges
        x_e = jnp.pad(x_e, ((0, pad), (0, 0), (0, 0)))
        w1 = jnp.pad(w1, ((0, pad), (0, 0), (0, 0)))
        w2 = jnp.pad(w2, ((0, pad), (0, 0), (0, 0)))
        packed = jnp.pad(packed, ((0, pad), (0, 0), (0, 0)))

    grid = (e_pad // e_tile,)

    cost = pl.CostEstimate(
        flops=2 * e_pad * dtpt * (ip_dim * H + H * H + H),
        transcendentals=2 * e_pad * dtpt,                      # 2 rsqrt/(e,d)
        bytes_accessed=(x_e.size * 2 + w1.size * 2 + w2.size * 2
                        + packed.size * 4 + e_pad * dtpt * 4),
    )

    out_edge_major = pl.pallas_call(
        rt_nw_kernel,
        out_shape=jax.ShapeDtypeStruct((e_pad, dtpt), jnp.float32),
        grid_spec=pltpu.PrefetchScalarGridSpec(
            num_scalar_prefetch=0,
            grid=grid,
            in_specs=[
                pl.BlockSpec((e_tile, dtpt, ip_dim), lambda e: (e, 0, 0)),
                pl.BlockSpec((e_tile, ip_dim, H_DIM1), lambda e: (e, 0, 0)),
                pl.BlockSpec((e_tile, H_DIM1, H_DIM2), lambda e: (e, 0, 0)),
                pl.BlockSpec((e_tile, _N_PACKED_ROWS, H), lambda e: (e, 0, 0)),
            ],
            out_specs=pl.BlockSpec((e_tile, dtpt), lambda e: (e, 0)),
        ),
        compiler_params=pltpu.CompilerParams(
            dimension_semantics=("parallel",),
            vmem_limit_bytes=vmem_limit,
        ),
        cost_estimate=cost,
    )(x_e, w1, w2, packed)

    out = out_edge_major[:num_edges]          # drop zero-padded edges
    # torch.cat(dim=0) over per-edge (dtpt, 1) blocks, then reshape(dtpt,E,1):
    # edge-major flat order == cat order, so a flat reshape reproduces it.
    return out.reshape(-1).reshape(dtpt, num_edges, O_DIM)


# --------------------------------------------------------------------------
# Params + pure-JAX reference (PyTorch eval-mode semantics, f32)
# --------------------------------------------------------------------------
def init_params(key, num_edges, ip_dim):
    ks = jax.random.split(key, 6)

    def lin_w(k, e, fan_in, fan_out):
        bound = 1.0 / jnp.sqrt(fan_in)
        return jax.random.uniform(k, (e, fan_in, fan_out), jnp.float32,
                                  -bound, bound)

    def lin_b(k, e, fan_in, fan_out):
        bound = 1.0 / jnp.sqrt(fan_in)
        return jax.random.uniform(k, (e, 1, fan_out), jnp.float32,
                                  -bound, bound)

    w1 = lin_w(ks[0], num_edges, ip_dim, H_DIM1)
    b1 = lin_b(ks[1], num_edges, ip_dim, H_DIM1)
    g1 = jnp.ones((num_edges, 1, H_DIM1), jnp.float32)
    be1 = jnp.zeros((num_edges, 1, H_DIM1), jnp.float32)
    w2 = lin_w(ks[2], num_edges, H_DIM1, H_DIM2)
    b2 = lin_b(ks[3], num_edges, H_DIM1, H_DIM2)
    g2 = jnp.ones((num_edges, 1, H_DIM2), jnp.float32)
    be2 = jnp.zeros((num_edges, 1, H_DIM2), jnp.float32)
    wop = lin_w(ks[4], num_edges, H_DIM2, O_DIM)
    bop = lin_b(ks[5], num_edges, H_DIM2, O_DIM)
    return (w1, b1, g1, be1, w2, b2, g2, be2, wop, bop)


def rt_nw_reference(x, params):
    dtpt, num_edges, _ = x.shape
    (w1, b1, g1, be1, w2, b2, g2, be2, wop, bop) = params
    outs = []
    for e in range(num_edges):
        h = x[:, e, :] @ w1[e] + b1[e]
        h = _leaky_relu(h)
        h = _layer_norm(h, g1[e], be1[e])
        h = h @ w2[e] + b2[e]
        h = _leaky_relu(h)
        h = _layer_norm(h, g2[e], be2[e])
        outs.append(h @ wop[e] + bop[e])
    cat = jnp.concatenate(outs, axis=0)          # (E*dtpt, 1)
    return cat.reshape(dtpt, num_edges, O_DIM)


if __name__ == "__main__":
    dtpt, num_edges, ip_dim = 8, 12, 16          # E=12 exercises edge padding

    key = jax.random.PRNGKey(0)
    k_x, k_p = jax.random.split(key)
    x = jax.random.normal(k_x, (dtpt, num_edges, ip_dim), jnp.float32)
    params = init_params(k_p, num_edges, ip_dim)
    prepped = prepare_params(params)             # hoisted one-time param prep

    fwd = jax.jit(rt_nw_forward)
    out = jax.block_until_ready(fwd(x, prepped))
    ref = jax.block_until_ready(rt_nw_reference(x, params))

    assert out.shape == (dtpt, num_edges, O_DIM), out.shape
    # Tolerance loosened for the bf16 weight/activation stream (f32 accumulate).
    assert jnp.allclose(out, ref, atol=5e-2, rtol=5e-2), float(
        jnp.max(jnp.abs(out - ref)))
    print("KERNEL_OK")
</pallas_src>

<mosaic_0001>
module attributes {stable_mosaic.version = 11 : i64} {
  func.func @rt_nw_kernel(%arg0: i32, %arg1: memref<16x8x16xbf16, #tpu.memory_space<vmem>>, %arg2: memref<16x16x100xbf16, #tpu.memory_space<vmem>>, %arg3: memref<16x100x100xbf16, #tpu.memory_space<vmem>>, %arg4: memref<16x8x100xf32, #tpu.memory_space<vmem>>, %arg5: memref<16x8xf32, #tpu.memory_space<vmem>>) attributes {dimension_semantics = [#tpu.dimension_semantics<parallel>], iteration_bounds = array<i64: 1>, scalar_prefetch = 0 : i64, scratch_operands = 0 : i64, tpu.core_type = #tpu.core_type<tc>, window_params = [{transform_indices = @transform_0, window_bounds = array<i64: 16, 8, 16>}, {transform_indices = @transform_1, window_bounds = array<i64: 16, 16, 100>}, {transform_indices = @transform_2, window_bounds = array<i64: 16, 100, 100>}, {transform_indices = @transform_3, window_bounds = array<i64: 16, 8, 100>}, {transform_indices = @transform_4, window_bounds = array<i64: 16, 8>}]} {
    %c0 = arith.constant 0 : index
    %c0_0 = arith.constant 0 : index
    %c0_1 = arith.constant 0 : index
    %0 = vector.load %arg1[%c0, %c0_0, %c0_1] : memref<16x8x16xbf16, #tpu.memory_space<vmem>>, vector<16x8x16xbf16>
    %c0_2 = arith.constant 0 : index
    %c0_3 = arith.constant 0 : index
    %c0_4 = arith.constant 0 : index
    %1 = vector.load %arg2[%c0_2, %c0_3, %c0_4] : memref<16x16x100xbf16, #tpu.memory_space<vmem>>, vector<16x16x100xbf16>
    %c0_5 = arith.constant 0 : index
    %c0_6 = arith.constant 0 : index
    %c0_7 = arith.constant 0 : index
    %2 = vector.load %arg3[%c0_5, %c0_6, %c0_7] : memref<16x100x100xbf16, #tpu.memory_space<vmem>>, vector<16x100x100xbf16>
    %c0_8 = arith.constant 0 : index
    %c0_9 = arith.constant 0 : index
    %c0_10 = arith.constant 0 : index
    %3 = vector.load %arg4[%c0_8, %c0_9, %c0_10] : memref<16x8x100xf32, #tpu.memory_space<vmem>>, vector<16x8x100xf32>
    %4 = vector.extract_strided_slice %3 {offsets = [0, 0, 0], sizes = [16, 1, 100], strides = [1, 1, 1]} : vector<16x8x100xf32> to vector<16x1x100xf32>
    %5 = vector.extract_strided_slice %3 {offsets = [0, 1, 0], sizes = [16, 1, 100], strides = [1, 1, 1]} : vector<16x8x100xf32> to vector<16x1x100xf32>
    %6 = vector.extract_strided_slice %3 {offsets = [0, 2, 0], sizes = [16, 1, 100], strides = [1, 1, 1]} : vector<16x8x100xf32> to vector<16x1x100xf32>
    %7 = vector.extract_strided_slice %3 {offsets = [0, 3, 0], sizes = [16, 1, 100], strides = [1, 1, 1]} : vector<16x8x100xf32> to vector<16x1x100xf32>
    %8 = vector.extract_strided_slice %3 {offsets = [0, 4, 0], sizes = [16, 1, 100], strides = [1, 1, 1]} : vector<16x8x100xf32> to vector<16x1x100xf32>
    %9 = vector.extract_strided_slice %3 {offsets = [0, 5, 0], sizes = [16, 1, 100], strides = [1, 1, 1]} : vector<16x8x100xf32> to vector<16x1x100xf32>
    %10 = vector.extract_strided_slice %3 {offsets = [0, 6, 0], sizes = [16, 1, 100], strides = [1, 1, 1]} : vector<16x8x100xf32> to vector<16x1x100xf32>
    %11 = vector.extract_strided_slice %3 {offsets = [0, 7, 0], sizes = [16, 1, 1], strides = [1, 1, 1]} : vector<16x8x100xf32> to vector<16x1x1xf32>
    %12 = vector.shape_cast %11 : vector<16x1x1xf32> to vector<16x1xf32>
    "tpu.trace_start"() <{level = 10 : i32, message = "edi,eih->edh"}> : () -> ()
    %cst = arith.constant dense<0.000000e+00> : vector<16x8x100xf32>
    %13 = tpu.matmul %0, %1, %cst {dimension_numbers = #tpu.dot_dimension_numbers<[2], [1], [1], [2], [0, 0, 0, 1, 1, 2], [0], [0]>} : vector<16x8x16xbf16>, vector<16x16x100xbf16>, vector<16x8x100xf32> -> vector<16x8x100xf32>
    "tpu.trace_stop"() : () -> ()
    %14 = vector.broadcast %4 : vector<16x1x100xf32> to vector<16x8x100xf32>
    %15 = arith.addf %13, %14 : vector<16x8x100xf32>
    %cst_11 = arith.constant 0.000000e+00 : f32
    %16 = vector.broadcast %cst_11 : f32 to vector<16x8x100xf32>
    %17 = arith.cmpf ogt, %15, %16 : vector<16x8x100xf32>
    %cst_12 = arith.constant 0.00999999977 : f32
    %18 = vector.broadcast %cst_12 : f32 to vector<16x8x100xf32>
    %19 = arith.mulf %18, %15 : vector<16x8x100xf32>
    %20 = arith.select %17, %15, %19 : vector<16x8x100xi1>, vector<16x8x100xf32>
    %cst_13 = arith.constant dense<0.000000e+00> : vector<16x8xf32>
    %21 = vector.multi_reduction <add>, %20, %cst_13 [2] : vector<16x8x100xf32> to vector<16x8xf32>
    %22 = vector.shape_cast %21 : vector<16x8xf32> to vector<16x8x1xf32>
    %cst_14 = arith.constant 1.000000e+02 : f32
    %23 = vector.broadcast %cst_14 : f32 to vector<16x8x1xf32>
    %24 = arith.divf %22, %23 : vector<16x8x1xf32>
    %25 = vector.broadcast %24 : vector<16x8x1xf32> to vector<16x8x100xf32>
    %26 = arith.subf %20, %25 : vector<16x8x100xf32>
    %27 = arith.mulf %26, %26 : vector<16x8x100xf32>
    %cst_15 = arith.constant dense<0.000000e+00> : vector<16x8xf32>
    %28 = vector.multi_reduction <add>, %27, %cst_15 [2] : vector<16x8x100xf32> to vector<16x8xf32>
    %29 = vector.shape_cast %28 : vector<16x8xf32> to vector<16x8x1xf32>
    %cst_16 = arith.constant 1.000000e+02 : f32
    %30 = vector.broadcast %cst_16 : f32 to vector<16x8x1xf32>
    %31 = arith.divf %29, %30 : vector<16x8x1xf32>
    %32 = vector.broadcast %24 : vector<16x8x1xf32> to vector<16x8x100xf32>
    %33 = arith.subf %20, %32 : vector<16x8x100xf32>
    %cst_17 = arith.constant 9.99999974E-6 : f32
    %34 = vector.broadcast %cst_17 : f32 to vector<16x8x1xf32>
    %35 = arith.addf %31, %34 : vector<16x8x1xf32>
    %36 = math.rsqrt %35 : vector<16x8x1xf32>
    %37 = vector.broadcast %36 : vector<16x8x1xf32> to vector<16x8x100xf32>
    %38 = arith.mulf %33, %37 : vector<16x8x100xf32>
    %39 = vector.broadcast %5 : vector<16x1x100xf32> to vector<16x8x100xf32>
    %40 = arith.mulf %38, %39 : vector<16x8x100xf32>
    %41 = vector.broadcast %6 : vector<16x1x100xf32> to vector<16x8x100xf32>
    %42 = arith.addf %40, %41 : vector<16x8x100xf32>
    %43 = arith.truncf %42 : vector<16x8x100xf32> to vector<16x8x100xbf16>
    "tpu.trace_start"() <{level = 10 : i32, message = "edh,ehk->edk"}> : () -> ()
    %cst_18 = arith.constant dense<0.000000e+00> : vector<16x8x100xf32>
    %44 = tpu.matmul %43, %2, %cst_18 {dimension_numbers = #tpu.dot_dimension_numbers<[2], [1], [1], [2], [0, 0, 0, 1, 1, 2], [0], [0]>} : vector<16x8x100xbf16>, vector<16x100x100xbf16>, vector<16x8x100xf32> -> vector<16x8x100xf32>
    "tpu.trace_stop"() : () -> ()
    %45 = vector.broadcast %7 : vector<16x1x100xf32> to vector<16x8x100xf32>
    %46 = arith.addf %44, %45 : vector<16x8x100xf32>
    %cst_19 = arith.constant 0.000000e+00 : f32
    %47 = vector.broadcast %cst_19 : f32 to vector<16x8x100xf32>
    %48 = arith.cmpf ogt, %46, %47 : vector<16x8x100xf32>
    %cst_20 = arith.constant 0.00999999977 : f32
    %49 = vector.broadcast %cst_20 : f32 to vector<16x8x100xf32>
    %50 = arith.mulf %49, %46 : vector<16x8x100xf32>
    %51 = arith.select %48, %46, %50 : vector<16x8x100xi1>, vector<16x8x100xf32>
    %cst_21 = arith.constant dense<0.000000e+00> : vector<16x8xf32>
    %52 = vector.multi_reduction <add>, %51, %cst_21 [2] : vector<16x8x100xf32> to vector<16x8xf32>
    %53 = vector.shape_cast %52 : vector<16x8xf32> to vector<16x8x1xf32>
    %cst_22 = arith.constant 1.000000e+02 : f32
    %54 = vector.broadcast %cst_22 : f32 to vector<16x8x1xf32>
    %55 = arith.divf %53, %54 : vector<16x8x1xf32>
    %56 = vector.broadcast %55 : vector<16x8x1xf32> to vector<16x8x100xf32>
    %57 = arith.subf %51, %56 : vector<16x8x100xf32>
    %58 = arith.mulf %57, %57 : vector<16x8x100xf32>
    %cst_23 = arith.constant dense<0.000000e+00> : vector<16x8xf32>
    %59 = vector.multi_reduction <add>, %58, %cst_23 [2] : vector<16x8x100xf32> to vector<16x8xf32>
    %60 = vector.shape_cast %59 : vector<16x8xf32> to vector<16x8x1xf32>
    %cst_24 = arith.constant 1.000000e+02 : f32
    %61 = vector.broadcast %cst_24 : f32 to vector<16x8x1xf32>
    %62 = arith.divf %60, %61 : vector<16x8x1xf32>
    %63 = vector.broadcast %55 : vector<16x8x1xf32> to vector<16x8x100xf32>
    %64 = arith.subf %51, %63 : vector<16x8x100xf32>
    %cst_25 = arith.constant 9.99999974E-6 : f32
    %65 = vector.broadcast %cst_25 : f32 to vector<16x8x1xf32>
    %66 = arith.addf %62, %65 : vector<16x8x1xf32>
    %67 = math.rsqrt %66 : vector<16x8x1xf32>
    %68 = vector.broadcast %67 : vector<16x8x1xf32> to vector<16x8x100xf32>
    %69 = arith.mulf %64, %68 : vector<16x8x100xf32>
    %70 = vector.broadcast %8 : vector<16x1x100xf32> to vector<16x8x100xf32>
    %71 = arith.mulf %69, %70 : vector<16x8x100xf32>
    %72 = vector.broadcast %9 : vector<16x1x100xf32> to vector<16x8x100xf32>
    %73 = arith.addf %71, %72 : vector<16x8x100xf32>
    %74 = vector.broadcast %10 : vector<16x1x100xf32> to vector<16x8x100xf32>
    %75 = arith.mulf %73, %74 : vector<16x8x100xf32>
    %cst_26 = arith.constant dense<0.000000e+00> : vector<16x8xf32>
    %76 = vector.multi_reduction <add>, %75, %cst_26 [2] : vector<16x8x100xf32> to vector<16x8xf32>
    %77 = vector.broadcast %12 : vector<16x1xf32> to vector<16x8xf32>
    %78 = arith.addf %76, %77 : vector<16x8xf32>
    %c0_27 = arith.constant 0 : index
    %c0_28 = arith.constant 0 : index
    %79 = vector.load %arg5[%c0_27, %c0_28] : memref<16x8xf32, #tpu.memory_space<vmem>>, vector<16x8xf32>
    tpu.vector_store %arg5[%c0_27, %c0_28], %78 {strides = array<i32>} : memref<16x8xf32, #tpu.memory_space<vmem>>, vector<16x8xf32>,
    return
  }
  func.func @transform_0(%arg0: i32) -> (i32, i32, i32) {
    %c0_i32 = arith.constant 0 : i32
    %c0_i32_0 = arith.constant 0 : i32
    %c0_i32_1 = arith.constant 0 : i32
    return %arg0, %c0_i32, %c0_i32_0 : i32, i32, i32
  }
  func.func @transform_1(%arg0: i32) -> (i32, i32, i32) {
    %c0_i32 = arith.constant 0 : i32
    %c0_i32_0 = arith.constant 0 : i32
    %c0_i32_1 = arith.constant 0 : i32
    return %arg0, %c0_i32, %c0_i32_0 : i32, i32, i32
  }
  func.func @transform_2(%arg0: i32) -> (i32, i32, i32) {
    %c0_i32 = arith.constant 0 : i32
    %c0_i32_0 = arith.constant 0 : i32
    %c0_i32_1 = arith.constant 0 : i32
    return %arg0, %c0_i32, %c0_i32_0 : i32, i32, i32
  }
  func.func @transform_3(%arg0: i32) -> (i32, i32, i32) {
    %c0_i32 = arith.constant 0 : i32
    %c0_i32_0 = arith.constant 0 : i32
    %c0_i32_1 = arith.constant 0 : i32
    return %arg0, %c0_i32, %c0_i32_0 : i32, i32, i32
  }
  func.func @transform_4(%arg0: i32) -> (i32, i32) {
    %c0_i32 = arith.constant 0 : i32
    %c0_i32_0 = arith.constant 0 : i32
    return %arg0, %c0_i32 : i32, i32
  }
}

</mosaic_0001>

<bundles_post_ra>
// kernel: rt_nw_forward.1
= control target key start
LH: loop header
LB: loop body
LE: loop exit
PB: predicated region body
PF: predicated region fallthrough
CT: control target
= control target key end

     0   :  { %vm312_vm0 = vcmask 130048   ;;  %vm707_vm2 = vcmask 818176   ;;  %s5059_s1 = inlined_call_operand.vmem [shape: bf16[16,16,100], index: 1, kind: input, shape index: {}]   ;;  %s5060_s0 = inlined_call_operand.vmem [shape: bf16[16,8,16], index: 0, kind: input, shape index: {}]   ;;  %s5061_s3 = inlined_call_operand.vmem [shape: f32[16,8,100], index: 3, kind: input, shape index: {}]   ;;  %s5062_s2 = inlined_call_operand.vmem [shape: bf16[16,100,100], index: 2, kind: input, shape index: {}]   ;;  %s5063_s4 = inlined_call_operand.vmem [shape: f32[16,8], index: 4, kind: output, shape index: {}]  }
   0x1   :  { %v3340_v0 = vld [vmem:[%s5059_s1] sm:$0xff]  ;;  %v3341_v1 = vld [vmem:[%s5059_s1 + $0x8] sm:$0xff]  ;;  %v3342_v2 = vld [vmem:[%s5059_s1 + $0x10] sm:$0xff] }
   0x2   :  { %v3343_v3 = vld [vmem:[%s5059_s1 + $0x18] sm:$0xff]  ;;  %v18_v4 = vld [vmem:[%s5060_s0] sm:$0xf]  ;;  %323 = vmatpush.bf16.msra.mxu0 %v3340_v0  ;;  %345 = vmatpush.bf16.msra.mxu1 %v3341_v1  ;;  %v19_v5 = vld [vmem:[%s5060_s0 + $0x4] sm:$0xf] }
   0x3   :  { %v20_v6 = vld [vmem:[%s5060_s0 + $0x8] sm:$0xf]  ;;  %v3344_v7 = vld [vmem:[%s5059_s1 + $0x20] sm:$0xff]  ;;  %367 = vmatpush.bf16.msra.mxu2 %v3342_v2  ;;  %389 = vmatpush.bf16.msra.mxu3 %v3343_v3  ;;  %v21_v8 = vld [vmem:[%s5060_s0 + $0xc] sm:$0xf] }
   0x4   :  { %v3345_v9 = vld [vmem:[%s5059_s1 + $0x28] sm:$0xff]  ;;  %v3346_v10 = vld [vmem:[%s5059_s1 + $0x30] sm:$0xff]  ;;  %v3347_v11 = vld [vmem:[%s5059_s1 + $0x38] sm:$0xff] }
   0x5   :  { %2864 = vmatmul.msk.bf16.vlgmr.msra.gmra.mxu0 %vm312_vm0, %v18_v4  ;;  %2869 = vmatmul.msk.bf16.vlgmr.msra.gmra.mxu1 %vm312_vm0, %v19_v5  ;;  %v3348_v12 = vld [vmem:[%s5059_s1 + $0x40] sm:$0xff]  ;;  %v3350_v13 = vld [vmem:[%s5059_s1 + $0x50] sm:$0xff]  ;;  %v3351_v14 = vld [vmem:[%s5059_s1 + $0x58] sm:$0xff] }
   0x6   :  { %411 = vmatpush.bf16.msrb.mxu0 %v3344_v7  ;;  %2874 = vmatmul.msk.bf16.vlgmr.msra.gmra.mxu2 %vm312_vm0, %v20_v6  ;;  %v3349_v15 = vld [vmem:[%s5059_s1 + $0x48] sm:$0xff]  ;;  %v22_v16 = vld [vmem:[%s5060_s0 + $0x10] sm:$0xf]  ;;  %v23_v17 = vld [vmem:[%s5060_s0 + $0x14] sm:$0xf] }
   0x7   :  { %2879 = vmatmul.msk.bf16.vlgmr.msra.gmra.mxu3 %vm312_vm0, %v21_v8  ;;  %433 = vmatpush.bf16.msrb.mxu1 %v3345_v9  ;;  %v24_v18 = vld [vmem:[%s5060_s0 + $0x18] sm:$0xf]  ;;  %v25_v19 = vld [vmem:[%s5060_s0 + $0x1c] sm:$0xf]  ;;  %v3354_v20 = vld [vmem:[%s5059_s1 + $0x70] sm:$0xff] }
   0x8   :  { %455 = vmatpush.bf16.msrb.mxu2 %v3346_v10  ;;  %477 = vmatpush.bf16.msrb.mxu3 %v3347_v11  ;;  %v3355_v21 = vld [vmem:[%s5059_s1 + $0x78] sm:$0xff]  ;;  %v26_v22 = vld [vmem:[%s5060_s0 + $0x20] sm:$0xf]  ;;  %v27_v23 = vld [vmem:[%s5060_s0 + $0x24] sm:$0xf] }
   0x9   :  { %v28_v24 = vld [vmem:[%s5060_s0 + $0x28] sm:$0xf]  ;;  %v29_v25 = vld [vmem:[%s5060_s0 + $0x2c] sm:$0xf]  ;;  %v32_v26 = vld [vmem:[%s5060_s0 + $0x38] sm:$0xf] }
   0xa   :  { %499 = vmatpush.bf16.msra.mxu0 %v3348_v12  ;;  %v33_v27 = vld [vmem:[%s5060_s0 + $0x3c] sm:$0xf]  ;;  %v3353_v28 = vld [vmem:[%s5059_s1 + $0x68] sm:$0xff]  ;;  %v3352_v29 = vld [vmem:[%s5059_s1 + $0x60] sm:$0xff] }
   0xb   :  { %521 = vmatpush.bf16.msra.mxu1 %v3349_v15  ;;  %v31_v30 = vld [vmem:[%s5060_s0 + $0x34] sm:$0xf]  ;;  %v30_v31 = vld [vmem:[%s5060_s0 + $0x30] sm:$0xf]  ;;  %v3691_v32 = vld [vmem:[%s5061_s3] sm:$0xff] }
   0xc   :  { %543 = vmatpush.bf16.msra.mxu2 %v3350_v13  ;;  %565 = vmatpush.bf16.msra.mxu3 %v3351_v14  ;;  %v3696_v33 = vld [vmem:[%s5061_s3 + $0x8] sm:$0xff]  ;;  %v290_v34 = vperm.slane %v3691_v32, 0  ;;  %v3703_v40 = vld [vmem:[%s5061_s3 + $0x10] sm:$0xff]  ;;  %v3708_v42 = vld [vmem:[%s5061_s3 + $0x18] sm:$0xff] }
   0xd   :  { %v291_v35 = vperm.slane %v3696_v33, 0  ;;  %v292_v43 = vperm.slane %v3703_v40, 0  ;;  %v293_v46 = vperm.slane %v3708_v42, 0  ;;  %v3721_v56 = vld [vmem:[%s5061_s3 + $0x20] sm:$0xff]  ;;  %v279_v57 = vld [vmem:[%s5061_s3 + $0x28] sm:$0xff]  ;;  %v3736_v6 = vld [vmem:[%s5061_s3 + $0x30] sm:$0xff] }
   0xe   :  { %v294_v61 = vperm.slane %v3721_v56, 0  ;;  %v295_v62 = vperm.slane %v279_v57, 0  ;;  %v3741_v7 = vld [vmem:[%s5061_s3 + $0x38] sm:$0xff]  ;;  %v296_v11 = vperm.slane %v3736_v6, 0 }
   0xf   :  { %v297_v12 = vperm.slane %v3741_v7, 0 }
  0x15   :  { %2884 = vmatmul.msk.bf16.vlgmr.msrb.gmra.mxu0 %vm312_vm0, %v22_v16  ;;  %2889 = vmatmul.msk.bf16.vlgmr.msrb.gmra.mxu1 %vm312_vm0, %v23_v17 }
  0x16   :  { %2894 = vmatmul.msk.bf16.vlgmr.msrb.gmra.mxu2 %vm312_vm0, %v24_v18  ;;  %609 = vmatpush.bf16.msrb.mxu1 %v3353_v28 }
  0x17   :  { %2899 = vmatmul.msk.bf16.vlgmr.msrb.gmra.mxu3 %vm312_vm0, %v25_v19  ;;  %631 = vmatpush.bf16.msrb.mxu2 %v3354_v20 }
  0x18   :  { %653 = vmatpush.bf16.msrb.mxu3 %v3355_v21  ;;  %587 = vmatpush.bf16.msrb.mxu0 %v3352_v29 }
  0x25   :  { %2904 = vmatmul.msk.bf16.vlgmr.msra.gmra.mxu0 %vm312_vm0, %v26_v22  ;;  %2909 = vmatmul.msk.bf16.vlgmr.msra.gmra.mxu1 %vm312_vm0, %v27_v23 }
  0x26   :  { %2914 = vmatmul.msk.bf16.vlgmr.msra.gmra.mxu2 %vm312_vm0, %v28_v24  ;;  %v282_v24 = vld [vmem:[%s5061_s3 + $0x40] sm:$0xff] }
  0x27   :  { %2919 = vmatmul.msk.bf16.vlgmr.msra.gmra.mxu3 %vm312_vm0, %v29_v25  ;;  %v298_v29 = vperm.slane %v282_v24, 0 }
  0x35   :  { %2929 = vmatmul.msk.bf16.vlgmr.msrb.gmra.mxu1 %vm312_vm0, %v31_v30  ;;  %2924 = vmatmul.msk.bf16.vlgmr.msrb.gmra.mxu0 %vm312_vm0, %v30_v31 }
  0x36   :  { %2934 = vmatmul.msk.bf16.vlgmr.msrb.gmra.mxu2 %vm312_vm0, %v32_v26 }
  0x37   :  { %2939 = vmatmul.msk.bf16.vlgmr.msrb.gmra.mxu3 %vm312_vm0, %v33_v27 }
  0x82   :  { %v325_v36 = vpop.f32.mrf.mxu0  ;;  %v347_v37 = vpop.f32.mrf.mxu1 }
  0x83   :  { %v326_v38 = vadd.f32 %v325_v36, %v290_v34  ;;  %v348_v39 = vadd.f32 %v347_v37, %v291_v35 }
  0x85   :  { %v675_v41 = vmul.f32 0.01, %v326_v38  ;;  %vm659_vm1 = vcmp.gt.f32.partialorder %v326_v38, 0.0  ;;  %v676_v44 = vmul.f32 0.01, %v348_v39  ;;  %vm660_vm3 = vcmp.gt.f32.partialorder %v348_v39, 0.0 }
  0x87   :  { %v3711_v45 = vsel %vm659_vm1, %v326_v38, %v675_v41  ;;  %v3716_v53 = vsel %vm660_vm3, %v348_v39, %v676_v44  ;;  %v284_v38 = vld [vmem:[%s5061_s3 + $0x50] sm:$0xff]  ;;  %v285_v39 = vld [vmem:[%s5061_s3 + $0x58] sm:$0xff]  ;;  %v283_v41 = vld [vmem:[%s5061_s3 + $0x48] sm:$0xff] }
  0x88   :  { %v708_v47 = vsel %vm707_vm2, %v3711_v45, 0.0  ;;  %v711_v59 = vsel %vm707_vm2, %v3716_v53, 0.0 }
  0x89   :  { %v369_v48 = vpop.f32.mrf.mxu2  ;;  %709 = vadd.xlane.f32.xlu1 %v708_v47  ;;  %v301_v47 = vperm.slane %v285_v39, 0 }
  0x8a   :  { %v391_v49 = vpop.f32.mrf.mxu3  ;;  %v370_v50 = vadd.f32 %v369_v48, %v292_v43  ;;  %v327_v51 = vpop.f32.mrf.mxu0  ;;  %v299_v48 = vperm.slane %v283_v41, 0 }
  0x8b   :  { %v349_v52 = vpop.f32.mrf.mxu1  ;;  %v392_v55 = vadd.f32 %v391_v49, %v293_v46  ;;  %v300_v46 = vperm.slane %v284_v38, 0 }
  0x8c   :  { %v677_v54 = vmul.f32 0.01, %v370_v50  ;;  %vm661_vm4 = vcmp.gt.f32.partialorder %v370_v50, 0.0 }
  0x8d   :  { %v678_v63 = vmul.f32 0.01, %v392_v55  ;;  %vm662_vm5 = vcmp.gt.f32.partialorder %v392_v55, 0.0 }
  0x8e   :  { %v3726_v58 = vsel %vm661_vm4, %v370_v50, %v677_v54  ;;  %vm1205_vm4 = vcmask 1041408  }
  0x8f   :  { %v714_v60 = vsel %vm707_vm2, %v3726_v58, 0.0  ;;  %v3743_v8 = vsel %vm662_vm5, %v392_v55, %v678_v63 }
  0x90   :  { %715 = vadd.xlane.f32.xlu0 %v714_v60  ;;  %v717_v13 = vsel %vm707_vm2, %v3743_v8, 0.0 }
  0x91   :  { %v371_v0 = vpop.f32.mrf.mxu2  ;;  %712 = vadd.xlane.f32.xlu1 %v711_v59 }
  0x92   :  { %v393_v1 = vpop.f32.mrf.mxu3  ;;  %v413_v2 = vpop.f32.mrf.mxu0 }
  0x93   :  { %v435_v3 = vpop.f32.mrf.mxu1  ;;  %v414_v4 = vadd.f32 %v413_v2, %v294_v61 }
  0x94   :  { %v436_v5 = vadd.f32 %v435_v3, %v295_v62 }
  0x95   :  { %v679_v10 = vmul.f32 0.01, %v414_v4  ;;  %vm663_vm7 = vcmp.gt.f32.partialorder %v414_v4, 0.0 }
  0x96   :  { %v680_v9 = vmul.f32 0.01, %v436_v5  ;;  %vm664_vm6 = vcmp.gt.f32.partialorder %v436_v5, 0.0 }
  0x97   :  { %v3753_v21 = vsel %vm663_vm7, %v414_v4, %v679_v10  ;;  %v288_v10 = vld [vmem:[%s5061_s3 + $0x70] sm:$0xff] }
  0x98   :  { %v3749_v14 = vsel %vm664_vm6, %v436_v5, %v680_v9  ;;  %718 = vadd.xlane.f32.xlu0 %v717_v13  ;;  %v720_v25 = vsel %vm707_vm2, %v3753_v21, 0.0  ;;  %v304_v13 = vperm.slane %v288_v10, 0 }
  0x99   :  { %v723_v15 = vsel %vm707_vm2, %v3749_v14, 0.0  ;;  %v457_v16 = vpop.f32.mrf.mxu2 }
  0x9a   :  { %v479_v17 = vpop.f32.mrf.mxu3  ;;  %724 = vadd.xlane.f32.xlu1 %v723_v15  ;;  %v458_v18 = vadd.f32 %v457_v16, %v296_v11  ;;  %v415_v20 = vpop.f32.mrf.mxu0  ;;  %v289_v11 = vld [vmem:[%s5061_s3 + $0x78] sm:$0xff] }
  0x9b   :  { %v480_v19 = vadd.f32 %v479_v17, %v297_v12  ;;  %v437_v22 = vpop.f32.mrf.mxu1  ;;  %v305_v15 = vperm.slane %v289_v11, 0 }
  0x9c   :  { %v681_v23 = vmul.f32 0.01, %v458_v18  ;;  %vm665_vm8 = vcmp.gt.f32.partialorder %v458_v18, 0.0 }
  0x9d   :  { %v682_v26 = vmul.f32 0.01, %v480_v19  ;;  %vm666_vm9 = vcmp.gt.f32.partialorder %v480_v19, 0.0 }
  0x9e   :  { %v3760_v27 = vsel %vm665_vm8, %v458_v18, %v681_v23 }
  0x9f   :  { %v726_v28 = vsel %vm707_vm2, %v3760_v27, 0.0  ;;  %v3764_v35 = vsel %vm666_vm9, %v480_v19, %v682_v26 }
  0xa0   :  { %727 = vadd.xlane.f32.xlu2 %v726_v28  ;;  %721 = vadd.xlane.f32.xlu0 %v720_v25  ;;  %v729_v44 = vsel %vm707_vm2, %v3764_v35, 0.0 }
  0xa1   :  { %v459_v30 = vpop.f32.mrf.mxu2 }
  0xa2   :  { %v481_v31 = vpop.f32.mrf.mxu3  ;;  %v501_v34 = vpop.f32.mrf.mxu0  ;;  %v3549_v30 = vmov 100.0  }
  0xa3   :  { %v523_v36 = vpop.f32.mrf.mxu1  ;;  %v502_v37 = vadd.f32 %v501_v34, %v298_v29  ;;  %3457 = vrcp.f32 %v3549_v30 }
  0xa4   :  { %v524_v57 = vadd.f32 %v523_v36, %v299_v48 }
  0xa5   :  { %v683_v43 = vmul.f32 0.01, %v502_v37  ;;  %vm667_vm10 = vcmp.gt.f32.partialorder %v502_v37, 0.0 }
  0xa6   :  { %v684_v1 = vmul.f32 0.01, %v524_v57  ;;  %vm668_vm13 = vcmp.gt.f32.partialorder %v524_v57, 0.0 }
  0xa7   :  { %v3777_v49 = vsel %vm667_vm10, %v502_v37, %v683_v43 }
  0xa8   :  { %730 = vadd.xlane.f32.xlu2 %v729_v44  ;;  %v732_v50 = vsel %vm707_vm2, %v3777_v49, 0.0  ;;  %v3789_v9 = vsel %vm668_vm13, %v524_v57, %v684_v1 }
  0xa9   :  { %v545_v51 = vpop.f32.mrf.mxu2  ;;  %733 = vadd.xlane.f32.xlu1 %v732_v50  ;;  %v735_v12 = vsel %vm707_vm2, %v3789_v9, 0.0  ;;  %v3458_v34 = vpop.eup %3457 }
  0xaa   :  { %v567_v52 = vpop.f32.mrf.mxu3  ;;  %v546_v54 = vadd.f32 %v545_v51, %v300_v46  ;;  %v503_v60 = vpop.f32.mrf.mxu0  ;;  %v757_v36 = vmul.f32 100.0, %v3458_v34  ;;  %vm761_vm0 = vweird.f32 %v3458_v34  ;;  %v287_v46 = vld [vmem:[%s5061_s3 + $0x68] sm:$0xff] }
  0xab   :  { %v568_v55 = vadd.f32 %v567_v52, %v301_v47  ;;  %v525_v59 = vpop.f32.mrf.mxu1  ;;  %v303_v48 = vperm.slane %v287_v46, 0 }
  0xac   :  { %v685_v61 = vmul.f32 0.01, %v546_v54  ;;  %vm669_vm11 = vcmp.gt.f32.partialorder %v546_v54, 0.0  ;;  %v758_v38 = vsub.f32 1.0, %v757_v36 }
  0xad   :  { %v686_v62 = vmul.f32 0.01, %v568_v55  ;;  %vm670_vm12 = vcmp.gt.f32.partialorder %v568_v55, 0.0 }
  0xae   :  { %v3781_v63 = vsel %vm669_vm11, %v546_v54, %v685_v61  ;;  %v759_v41 = vmul.f32 %v3458_v34, %v758_v38 }
  0xaf   :  { %v3783_v0 = vsel %vm670_vm12, %v568_v55, %v686_v62  ;;  %v738_v2 = vsel %vm707_vm2, %v3781_v63, 0.0 }
  0xb0   :  { %v741_v3 = vsel %vm707_vm2, %v3783_v0, 0.0  ;;  %739 = vadd.xlane.f32.xlu2 %v738_v2  ;;  %v760_v44 = vadd.f32 %v3458_v34, %v759_v41 }
  0xb1   :  { %742 = vadd.xlane.f32.xlu0 %v741_v3  ;;  %v547_v4 = vpop.f32.mrf.mxu2 }
  0xb2   :  { %v569_v5 = vpop.f32.mrf.mxu3  ;;  %v589_v37 = vpop.f32.mrf.mxu0  ;;  %v3810_v47 = vsel %vm761_vm0, %v3458_v34, %v760_v44  ;;  %v286_v4 = vld [vmem:[%s5061_s3 + $0x60] sm:$0xff]  ;;  %v78_v44 = vld [vmem:[%s5062_s2 + $0x30] sm:$0x3] }
  0xb3   :  { %v611_v31 = vpop.f32.mrf.mxu1 }
  0xb4   :  { %v612_v52 = vadd.f32 %v611_v31, %v303_v48 }
  0xb6   :  { %v688_v57 = vmul.f32 0.01, %v612_v52  ;;  %vm672_vm1 = vcmp.gt.f32.partialorder %v612_v52, 0.0 }
  0xb8   :  { %736 = vadd.xlane.f32.xlu2 %v735_v12  ;;  %v3824_v3 = vsel %vm672_vm1, %v612_v52, %v688_v57  ;;  %v302_v12 = vperm.slane %v286_v4, 0 }
  0xb9   :  { %v633_v16 = vpop.f32.mrf.mxu2  ;;  %v747_v5 = vsel %vm707_vm2, %v3824_v3, 0.0 }
  0xba   :  { %v655_v17 = vpop.f32.mrf.mxu3  ;;  %v634_v18 = vadd.f32 %v633_v16, %v304_v13  ;;  %v591_v43 = vpop.f32.mrf.mxu0 }
  0xbb   :  { %v656_v19 = vadd.f32 %v655_v17, %v305_v15  ;;  %v613_v39 = vpop.f32.mrf.mxu1  ;;  %v590_v17 = vadd.f32 %v589_v37, %v302_v12 }
  0xbc   :  { %v689_v20 = vmul.f32 0.01, %v634_v18  ;;  %vm673_vm15 = vcmp.gt.f32.partialorder %v634_v18, 0.0  ;;  %v104_v39 = vld [vmem:[%s5062_s2 + $0x98] sm:$0x3] }
  0xbd   :  { %v690_v22 = vmul.f32 0.01, %v656_v19  ;;  %vm674_vm14 = vcmp.gt.f32.partialorder %v656_v19, 0.0  ;;  %vm671_vm3 = vcmp.gt.f32.partialorder %v590_v17, 0.0  ;;  %v1305_v41 = vunpack.c.l.b16 %v104_v39 }
  0xbe   :  { %v3801_v24 = vsel %vm673_vm15, %v634_v18, %v689_v20  ;;  %v687_v20 = vmul.f32 0.01, %v590_v17 }
  0xbf   :  { %v3799_v23 = vsel %vm674_vm14, %v656_v19, %v690_v22  ;;  %v750_v26 = vsel %vm707_vm2, %v3801_v24, 0.0  ;;  %v1312_v52 = vpack.c.b16 %v1305_v41, %v1305_v41 }
  0xc0   :  { %v753_v25 = vsel %vm707_vm2, %v3799_v23, 0.0  ;;  %751 = vadd.xlane.f32.xlu1 %v750_v26 }
  0xc1   :  { %754 = vadd.xlane.f32.xlu0 %v753_v25  ;;  %v635_v28 = vpop.f32.mrf.mxu2 }
  0xc2   :  { %v657_v29 = vpop.f32.mrf.mxu3 }
  0xc3   :  { %v3852_v29 = vsel %vm671_vm3, %v590_v17, %v687_v20 }
  0xc4   :  { %v744_v34 = vsel %vm707_vm2, %v3852_v29, 0.0 }
  0xfc   :  { %v710_v50 = vpop.xlane.xlu1 %709 }
  0xfd   :  { %v763_v51 = vmul.f32 %v3810_v47, %v710_v50  ;;  %v1188_v50 = vunpack.c.l.b16 %v78_v44 }
  0xff   :  { %v3814_v54 = vsub.f32 %v3711_v45, %v763_v51 }
 0x101   :  { %v795_v55 = vmul.f32 %v3814_v54, %v3814_v54 }
 0x103   :  { %v716_v59 = vpop.xlane.xlu0 %715  ;;  %v811_v60 = vsel %vm707_vm2, %v795_v55, 0.0 }
 0x104   :  { %v765_v61 = vmul.f32 %v3810_v47, %v716_v59  ;;  %812 = vadd.xlane.f32.xlu1 %v811_v60  ;;  %v713_v62 = vpop.xlane.xlu1 %712  ;;  %v1195_v59 = vpack.c.b16 %v1188_v50, %v1188_v50  ;;  %v1323_v60 = vsel %vm1205_vm4, %v1312_v52, 0  ;;  %v3361_v52 = vld [vmem:[%s5062_s2 + $0x28] sm:$0xff] }
 0x105   :  { %v764_v2 = vmul.f32 %v3810_v47, %v713_v62  ;;  %1326 = vmatpush.bf16.msra.mxu2 %v1323_v60  ;;  %v3377_v60 = vld [vmem:[%s5062_s2 + $0xb4] sm:$0xff] }
 0x106   :  { %v3821_v1 = vsub.f32 %v3726_v58, %v765_v61  ;;  %v1207_v4 = vsel %vm1205_vm4, %v1195_v59, 0  ;;  %v3370_v59 = vld [vmem:[%s5062_s2 + $0x78] sm:$0xff] }
 0x107   :  { %v3834_v10 = vsub.f32 %v3716_v53, %v764_v2  ;;  %v3373_v2 = vld [vmem:[%s5062_s2 + $0x90] sm:$0xff]  ;;  %1210 = vmatpush.bf16.msra.mxu0 %v1207_v4  ;;  %v3359_v4 = vld [vmem:[%s5062_s2 + $0x18] sm:$0xff] }
 0x108   :  { %v797_v45 = vmul.f32 %v3821_v1, %v3821_v1 }
 0x109   :  { %v796_v16 = vmul.f32 %v3834_v10, %v3834_v10  ;;  %1327 = vmatpush.bf16.msra.mxu2 %v3373_v2  ;;  %v3369_v2 = vld [vmem:[%s5062_s2 + $0x70] sm:$0xff] }
 0x10a   :  { %v817_v58 = vsel %vm707_vm2, %v797_v45, 0.0  ;;  %v3379_v45 = vld [vmem:[%s5062_s2 + $0xc4] sm:$0xff] }
 0x10b   :  { %v719_v11 = vpop.xlane.xlu0 %718  ;;  %818 = vadd.xlane.f32.xlu0 %v817_v58  ;;  %v814_v19 = vsel %vm707_vm2, %v796_v16, 0.0  ;;  %1211 = vmatpush.bf16.msra.mxu0 %v3361_v52  ;;  %v143_v52 = vld [vmem:[%s5062_s2 + $0x134] sm:$0x3] }
 0x10c   :  { %v766_v13 = vmul.f32 %v3810_v47, %v719_v11  ;;  %748 = vadd.xlane.f32.xlu1 %v747_v5 }
 0x10d   :  { %v725_v38 = vpop.xlane.xlu1 %724 }
 0x10e   :  { %v3839_v15 = vsub.f32 %v3743_v8, %v766_v13  ;;  %v768_v51 = vmul.f32 %v3810_v47, %v725_v38 }
 0x110   :  { %v798_v18 = vmul.f32 %v3839_v15, %v3839_v15  ;;  %v3892_v5 = vsub.f32 %v3749_v14, %v768_v51  ;;  %v3372_v14 = vld [vmem:[%s5062_s2 + $0x88] sm:$0xff] }
 0x111   :  { %1328 = vmatpush.bf16.msra.mxu2 %v3372_v14 }
 0x112   :  { %v820_v53 = vsel %vm707_vm2, %v798_v18, 0.0 }
 0x113   :  { %v728_v22 = vpop.xlane.xlu2 %727  ;;  %821 = vadd.xlane.f32.xlu2 %v820_v53  ;;  %v722_v25 = vpop.xlane.xlu0 %721  ;;  %815 = vadd.xlane.f32.xlu0 %v814_v19  ;;  %v800_v19 = vmul.f32 %v3892_v5, %v3892_v5 }
 0x114   :  { %v767_v26 = vmul.f32 %v3810_v47, %v722_v25  ;;  %v769_v8 = vmul.f32 %v3810_v47, %v728_v22 }
 0x116   :  { %v3850_v28 = vsub.f32 %v3753_v21, %v767_v26  ;;  %v3857_v31 = vsub.f32 %v3760_v27, %v769_v8  ;;  %v117_v27 = vld [vmem:[%s5062_s2 + $0xcc] sm:$0x3]  ;;  %v826_v8 = vsel %vm707_vm2, %v800_v19, 0.0  ;;  %v3366_v19 = vld [vmem:[%s5062_s2 + $0x54] sm:$0xff] }
 0x117   :  { %v1363_v43 = vunpack.c.l.b16 %v117_v27 }
 0x118   :  { %v799_v30 = vmul.f32 %v3850_v28, %v3850_v28  ;;  %v801_v48 = vmul.f32 %v3857_v31, %v3857_v31 }
 0x119   :  { %v1370_v55 = vpack.c.b16 %v1363_v43, %v1363_v43 }
 0x11a   :  { %v823_v36 = vsel %vm707_vm2, %v799_v30, 0.0 }
 0x11b   :  { %v731_v37 = vpop.xlane.xlu2 %730  ;;  %745 = vadd.xlane.f32.xlu2 %v744_v34  ;;  %824 = vadd.xlane.f32.xlu1 %v823_v36  ;;  %v1381_v61 = vsel %vm1205_vm4, %v1370_v55, 0  ;;  %v91_v55 = vld [vmem:[%s5062_s2 + $0x64] sm:$0x3] }
 0x11c   :  { %v770_v21 = vmul.f32 %v3810_v47, %v731_v37  ;;  %1384 = vmatpush.bf16.msra.mxu3 %v1381_v61  ;;  %v734_v12 = vpop.xlane.xlu1 %733 }
 0x11d   :  { %v771_v53 = vmul.f32 %v3810_v47, %v734_v12 }
 0x11e   :  { %v3873_v46 = vsub.f32 %v3764_v35, %v770_v21  ;;  %v829_v35 = vsel %vm707_vm2, %v801_v48, 0.0 }
 0x11f   :  { %v3915_v25 = vsub.f32 %v3777_v49, %v771_v53  ;;  %v3358_v53 = vld [vmem:[%s5062_s2 + $0x10] sm:$0xff] }
 0x120   :  { %v802_v57 = vmul.f32 %v3873_v46, %v3873_v46  ;;  %1385 = vmatpush.bf16.msra.mxu3 %v3379_v45  ;;  %v3376_v45 = vld [vmem:[%s5062_s2 + $0xac] sm:$0xff] }
 0x121   :  { %v803_v36 = vmul.f32 %v3915_v25, %v3915_v25 }
 0x122   :  { %v832_v62 = vsel %vm707_vm2, %v802_v57, 0.0  ;;  %v1247_v57 = vunpack.c.l.b16 %v91_v55  ;;  %v1479_v55 = vunpack.c.l.b16 %v143_v52 }
 0x123   :  { %v740_v58 = vpop.xlane.xlu2 %739  ;;  %830 = vadd.xlane.f32.xlu2 %v829_v35  ;;  %833 = vadd.xlane.f32.xlu0 %v832_v62  ;;  %v835_v21 = vsel %vm707_vm2, %v803_v36, 0.0  ;;  %v3360_v35 = vld [vmem:[%s5062_s2 + $0x20] sm:$0xff] }
 0x124   :  { %v743_v11 = vpop.xlane.xlu0 %742  ;;  %v773_v13 = vmul.f32 %v3810_v47, %v740_v58  ;;  %v1254_v61 = vpack.c.b16 %v1247_v57, %v1247_v57  ;;  %1212 = vmatpush.bf16.msra.mxu0 %v3360_v35  ;;  %v3367_v58 = vld [vmem:[%s5062_s2 + $0x5c] sm:$0xff]  ;;  %v1486_v35 = vpack.c.b16 %v1479_v55, %v1479_v55 }
 0x125   :  { %v774_v16 = vmul.f32 %v3810_v47, %v743_v11  ;;  %v156_v11 = vld [vmem:[%s5062_s2 + $0x168] sm:$0x3]  ;;  %v3397_v36 = vld [vmem:[%s5062_s2 + $0x160] sm:$0xff] }
 0x126   :  { %v3897_v17 = vsub.f32 %v3781_v63, %v773_v13  ;;  %v1265_v62 = vsel %vm1205_vm4, %v1254_v61, 0  ;;  %v1537_v12 = vunpack.c.l.b16 %v156_v11  ;;  %v3368_v13 = vld [vmem:[%s5062_s2 + $0x68] sm:$0xff]  ;;  %v3400_v11 = vld [vmem:[%s5062_s2 + $0x17c] sm:$0xff] }
 0x127   :  { %v3900_v18 = vsub.f32 %v3783_v0, %v774_v16  ;;  %1268 = vmatpush.bf16.msra.mxu1 %v1265_v62  ;;  %v3375_v16 = vld [vmem:[%s5062_s2 + $0xa4] sm:$0xff] }
 0x128   :  { %v805_v63 = vmul.f32 %v3897_v17, %v3897_v17  ;;  %1213 = vmatpush.bf16.msra.mxu0 %v3359_v4  ;;  %v1544_v14 = vpack.c.b16 %v1537_v12, %v1537_v12  ;;  %v3401_v61 = vld [vmem:[%s5062_s2 + $0x184] sm:$0xff] }
 0x129   :  { %v806_v20 = vmul.f32 %v3900_v18, %v3900_v18  ;;  %v3383_v12 = vld [vmem:[%s5062_s2 + $0xe8] sm:$0xff] }
 0x12a   :  { %v841_v22 = vsel %vm707_vm2, %v805_v63, 0.0  ;;  %v1555_v63 = vsel %vm1205_vm4, %v1544_v14, 0 }
 0x12b   :  { %v844_v0 = vsel %vm707_vm2, %v806_v20, 0.0  ;;  %v737_v26 = vpop.xlane.xlu2 %736  ;;  %842 = vadd.xlane.f32.xlu0 %v841_v22  ;;  %827 = vadd.xlane.f32.xlu2 %v826_v8  ;;  %v169_v20 = vld [vmem:[%s5062_s2 + $0x19c] sm:$0x3]  ;;  %v3357_v8 = vld [vmem:[%s5062_s2 + $0x8] sm:$0xff] }
 0x12c   :  { %845 = vadd.xlane.f32.xlu1 %v844_v0  ;;  %v772_v30 = vmul.f32 %v3810_v47, %v737_v26  ;;  %1269 = vmatpush.bf16.msra.mxu1 %v3367_v58  ;;  %v1595_v0 = vunpack.c.l.b16 %v169_v20  ;;  %v3374_v22 = vld [vmem:[%s5062_s2 + $0x9c] sm:$0xff] }
 0x12d   :  { %1214 = vmatpush.bf16.msra.mxu0 %v3358_v53  ;;  %v3393_v58 = vld [vmem:[%s5062_s2 + $0x140] sm:$0xff]  ;;  %v3392_v20 = vld [vmem:[%s5062_s2 + $0x138] sm:$0xff] }
 0x12e   :  { %v3920_v34 = vsub.f32 %v3789_v9, %v772_v30  ;;  %v1602_v26 = vpack.c.b16 %v1595_v0, %v1595_v0  ;;  %v3365_v30 = vld [vmem:[%s5062_s2 + $0x4c] sm:$0xff] }
 0x130   :  { %v804_v37 = vmul.f32 %v3920_v34, %v3920_v34  ;;  %1270 = vmatpush.bf16.msra.mxu1 %v3366_v19 }
 0x131   :  { %1215 = vmatpush.bf16.msra.mxu0 %v3357_v8 }
 0x132   :  { %v838_v49 = vsel %vm707_vm2, %v804_v37, 0.0  ;;  %v1613_v37 = vsel %vm1205_vm4, %v1602_v26, 0  ;;  %v3390_v26 = vld [vmem:[%s5062_s2 + $0x124] sm:$0xff] }
 0x133   :  { %839 = vadd.xlane.f32.xlu0 %v838_v49  ;;  %v752_v39 = vpop.xlane.xlu1 %751  ;;  %836 = vadd.xlane.f32.xlu2 %v835_v21  ;;  %v130_v49 = vld [vmem:[%s5062_s2 + $0x100] sm:$0x3] }
 0x134   :  { %v755_v38 = vpop.xlane.xlu0 %754  ;;  %v777_v41 = vmul.f32 %v3810_v47, %v752_v39  ;;  %1271 = vmatpush.bf16.msra.mxu1 %v3365_v30  ;;  %v3356_v21 = vld [vmem:[%s5062_s2] sm:$0xff] }
 0x135   :  { %v778_v27 = vmul.f32 %v3810_v47, %v755_v38  ;;  %v1421_v38 = vunpack.c.l.b16 %v130_v49  ;;  %v3364_v39 = vld [vmem:[%s5062_s2 + $0x44] sm:$0xff]  ;;  %1216 = vmatpush.bf16.msra.mxu0 %v3356_v21  ;;  %v3398_v49 = vld [vmem:[%s5062_s2 + $0x16c] sm:$0xff] }
 0x136   :  { %v3934_v43 = vsub.f32 %v3801_v24, %v777_v41  ;;  %v3378_v24 = vld [vmem:[%s5062_s2 + $0xbc] sm:$0xff] }
 0x137   :  { %v3931_v9 = vsub.f32 %v3799_v23, %v778_v27  ;;  %v3371_v23 = vld [vmem:[%s5062_s2 + $0x80] sm:$0xff]  ;;  %1386 = vmatpush.bf16.msra.mxu3 %v3378_v24  ;;  %v3396_v27 = vld [vmem:[%s5062_s2 + $0x158] sm:$0xff]  ;;  %v1428_v41 = vpack.c.b16 %v1421_v38, %v1421_v38 }
 0x138   :  { %v809_v48 = vmul.f32 %v3934_v43, %v3934_v43  ;;  %1329 = vmatpush.bf16.msra.mxu2 %v3371_v23  ;;  %1272 = vmatpush.bf16.msra.mxu1 %v3364_v39  ;;  %v3402_v23 = vld [vmem:[%s5062_s2 + $0x18c] sm:$0xff]  ;;  %v3385_v24 = vld [vmem:[%s5062_s2 + $0xf8] sm:$0xff] }
 0x139   :  { %v810_v44 = vmul.f32 %v3931_v9, %v3931_v9 }
 0x13a   :  { %v853_v51 = vsel %vm707_vm2, %v809_v48, 0.0  ;;  %v1439_v48 = vsel %vm1205_vm4, %v1428_v41, 0 }
 0x13b   :  { %v856_v50 = vsel %vm707_vm2, %v810_v44, 0.0  ;;  %854 = vadd.xlane.f32.xlu1 %v853_v51  ;;  %1387 = vmatpush.bf16.msra.mxu3 %v3377_v60  ;;  %v3403_v44 = vld [vmem:[%s5062_s2 + $0x194] sm:$0xff]  ;;  %v3394_v60 = vld [vmem:[%s5062_s2 + $0x148] sm:$0xff] }
 0x13c   :  { %857 = vadd.xlane.f32.xlu2 %v856_v50  ;;  %1330 = vmatpush.bf16.msra.mxu2 %v3370_v59  ;;  %v3363_v50 = vld [vmem:[%s5062_s2 + $0x3c] sm:$0xff]  ;;  %v3395_v51 = vld [vmem:[%s5062_s2 + $0x150] sm:$0xff] }
 0x13d   :  { %1442 = vmatpush.bf16.msrb.mxu0 %v1439_v48  ;;  %1273 = vmatpush.bf16.msra.mxu1 %v3363_v50  ;;  %v3362_v59 = vld [vmem:[%s5062_s2 + $0x34] sm:$0xff]  ;;  %v3389_v50 = vld [vmem:[%s5062_s2 + $0x11c] sm:$0xff] }
 0x13e   :  { %v3381_v48 = vld [vmem:[%s5062_s2 + $0xd8] sm:$0xff] }
 0x13f   :  { %1388 = vmatpush.bf16.msra.mxu3 %v3376_v45  ;;  %v1497_v45 = vsel %vm1205_vm4, %v1486_v35, 0  ;;  %v3380_v35 = vld [vmem:[%s5062_s2 + $0xd0] sm:$0xff] }
 0x140   :  { %1331 = vmatpush.bf16.msra.mxu2 %v3369_v2  ;;  %v3384_v2 = vld [vmem:[%s5062_s2 + $0xf0] sm:$0xff] }
 0x141   :  { %1443 = vmatpush.bf16.msrb.mxu0 %v3385_v24  ;;  %1274 = vmatpush.bf16.msra.mxu1 %v3362_v59 }
 0x143   :  { %1389 = vmatpush.bf16.msra.mxu3 %v3375_v16 }
 0x144   :  { %1332 = vmatpush.bf16.msra.mxu2 %v3368_v13  ;;  %v3391_v13 = vld [vmem:[%s5062_s2 + $0x12c] sm:$0xff] }
 0x145   :  { %1444 = vmatpush.bf16.msrb.mxu0 %v3384_v2  ;;  %1500 = vmatpush.bf16.msrb.mxu1 %v1497_v45 }
 0x147   :  { %1390 = vmatpush.bf16.msra.mxu3 %v3374_v22  ;;  %v3382_v22 = vld [vmem:[%s5062_s2 + $0xe0] sm:$0xff] }
 0x148   :  { %1558 = vmatpush.bf16.msrb.mxu2 %v1555_v63  ;;  %v3399_v63 = vld [vmem:[%s5062_s2 + $0x174] sm:$0xff] }
 0x149   :  { %1445 = vmatpush.bf16.msrb.mxu0 %v3383_v12  ;;  %1501 = vmatpush.bf16.msrb.mxu1 %v3391_v13  ;;  %v1099_v13 = vperm.slane %v3691_v32, 2 }
 0x14b   :  { %1616 = vmatpush.bf16.msrb.mxu3 %v1613_v37 }
 0x14c   :  { %1559 = vmatpush.bf16.msrb.mxu2 %v3397_v36 }
 0x14d   :  { %1446 = vmatpush.bf16.msrb.mxu0 %v3382_v22  ;;  %1502 = vmatpush.bf16.msrb.mxu1 %v3390_v26  ;;  %v1070_v22 = vperm.slane %v3708_v42, 1  ;;  %v3387_v26 = vld [vmem:[%s5062_s2 + $0x10c] sm:$0xff] }
 0x14f   :  { %1617 = vmatpush.bf16.msrb.mxu3 %v3403_v44 }
 0x150   :  { %1560 = vmatpush.bf16.msrb.mxu2 %v3396_v27 }
 0x151   :  { %1447 = vmatpush.bf16.msrb.mxu0 %v3381_v48  ;;  %1503 = vmatpush.bf16.msrb.mxu1 %v3389_v50 }
 0x153   :  { %1618 = vmatpush.bf16.msrb.mxu3 %v3402_v23 }
 0x154   :  { %1561 = vmatpush.bf16.msrb.mxu2 %v3395_v51 }
 0x155   :  { %1448 = vmatpush.bf16.msrb.mxu0 %v3380_v35 }
 0x157   :  { %1619 = vmatpush.bf16.msrb.mxu3 %v3401_v61 }
 0x158   :  { %1562 = vmatpush.bf16.msrb.mxu2 %v3394_v60  ;;  %v1067_v60 = vperm.slane %v3691_v32, 1  ;;  %v221_v32 = vld [vmem:[%s5062_s2 + $0x26c] sm:$0x3] }
 0x15b   :  { %1620 = vmatpush.bf16.msrb.mxu3 %v3400_v11 }
 0x15c   :  { %1563 = vmatpush.bf16.msrb.mxu2 %v3393_v58 }
 0x15f   :  { %1621 = vmatpush.bf16.msrb.mxu3 %v3399_v63 }
 0x160   :  { %1564 = vmatpush.bf16.msrb.mxu2 %v3392_v20 }
 0x163   :  { %1622 = vmatpush.bf16.msrb.mxu3 %v3398_v49  ;;  %v1101_v49 = vperm.slane %v3703_v40, 2 }
 0x177   :  { %v813_v57 = vpop.xlane.xlu1 %812 }
 0x178   :  { %v859_v62 = vmul.f32 %v813_v57, %v3810_v47  ;;  %v182_v57 = vld [vmem:[%s5062_s2 + $0x1d0] sm:$0x3] }
 0x179   :  { %v1653_v2 = vunpack.c.l.b16 %v182_v57 }
 0x17a   :  { %v875_v4 = vadd.f32 1e-05, %v859_v62  ;;  %v3388_v62 = vld [vmem:[%s5062_s2 + $0x114] sm:$0xff] }
 0x17b   :  { %1504 = vmatpush.bf16.msrb.mxu1 %v3388_v62  ;;  %v1660_v20 = vpack.c.b16 %v1653_v2, %v1653_v2 }
 0x17c   :  { %3459 = vrsqrt.f32 %v875_v4  ;;  %vm897_vm6 = vweird.f32 %v875_v4 }
 0x17e   :  { %v819_v16 = vpop.xlane.xlu0 %818 }
 0x17f   :  { %v861_v14 = vmul.f32 %v819_v16, %v3810_v47  ;;  %v749_v53 = vpop.xlane.xlu1 %748  ;;  %v208_v16 = vld [vmem:[%s5062_s2 + $0x238] sm:$0x3]  ;;  %1505 = vmatpush.bf16.msrb.mxu1 %v3387_v26 }
 0x180   :  { %v776_v19 = vmul.f32 %v3810_v47, %v749_v53 }
 0x181   :  { %v4073_v0 = vadd.f32 1e-05, %v861_v14  ;;  %v1069_v14 = vperm.slane %v3703_v40, 1  ;;  %v1671_v40 = vsel %vm1205_vm4, %v1660_v20, 0 }
 0x182   :  { %v3460_v8 = vpop.eup %3459  ;;  %v4082_v30 = vsub.f32 %v3824_v3, %v776_v19 }
 0x183   :  { %v892_v36 = vmul.f32 %v3460_v8, %v875_v4  ;;  %3461 = vrsqrt.f32 %v4073_v0  ;;  %vm898_vm5 = vweird.f32 %v3460_v8  ;;  %vm917_vm9 = vweird.f32 %v4073_v0 }
 0x184   :  { %v808_v37 = vmul.f32 %v4082_v30, %v4082_v30  ;;  %vm899_vm7 = vmor %vm897_vm6, %vm898_vm5 }
 0x185   :  { %v893_v38 = vmul.f32 %v3460_v8, %v892_v36 }
 0x186   :  { %v822_v21 = vpop.xlane.xlu2 %821  ;;  %v816_v39 = vpop.xlane.xlu0 %815  ;;  %v850_v3 = vsel %vm707_vm2, %v808_v37, 0.0 }
 0x187   :  { %v894_v27 = vmul.f32 0.5, %v893_v38  ;;  %v862_v41 = vmul.f32 %v822_v21, %v3810_v47  ;;  %v860_v44 = vmul.f32 %v816_v39, %v3810_v47  ;;  %851 = vadd.xlane.f32.xlu1 %v850_v3  ;;  %v1769_v38 = vunpack.c.l.b16 %v208_v16 }
 0x189   :  { %v3462_v51 = vpop.eup %3461  ;;  %v895_v23 = vsub.f32 1.5, %v894_v27  ;;  %v4099_v24 = vadd.f32 1e-05, %v862_v41  ;;  %v4101_v52 = vadd.f32 1e-05, %v860_v44  ;;  %v1827_v41 = vunpack.c.l.b16 %v221_v32 }
 0x18a   :  { %v912_v55 = vmul.f32 %v3462_v51, %v4073_v0  ;;  %vm918_vm8 = vweird.f32 %v3462_v51  ;;  %v1776_v2 = vpack.c.b16 %v1769_v38, %v1769_v38 }
 0x18b   :  { %v896_v59 = vmul.f32 %v3460_v8, %v895_v23  ;;  %3463 = vrsqrt.f32 %v4099_v24  ;;  %vm919_vm10 = vmor %vm917_vm9, %vm918_vm8  ;;  %v1834_v16 = vpack.c.b16 %v1827_v41, %v1827_v41  ;;  %vm927_vm13 = vweird.f32 %v4099_v24 }
 0x18c   :  { %v913_v61 = vmul.f32 %v3462_v51, %v912_v55  ;;  %3465 = vrsqrt.f32 %v4101_v52  ;;  %v1068_v55 = vperm.slane %v3696_v33, 1  ;;  %v1787_v26 = vsel %vm1205_vm4, %v1776_v2, 0 }
 0x18d   :  { %v900_v45 = vsel %vm899_vm7, %v3460_v8, %v896_v59  ;;  %v1071_v59 = vperm.slane %v3721_v56, 1  ;;  %vm907_vm15 = vweird.f32 %v4101_v52 }
 0x18e   :  { %v1051_v4 = vmul.f32 %v900_v45, %v3814_v54  ;;  %v914_v58 = vmul.f32 0.5, %v913_v61  ;;  %v746_v11 = vpop.xlane.xlu2 %745  ;;  %v825_v12 = vpop.xlane.xlu1 %824 }
 0x18f   :  { %v775_v53 = vmul.f32 %v3810_v47, %v746_v11  ;;  %v863_v19 = vmul.f32 %v825_v12, %v3810_v47  ;;  %v3409_v12 = vld [vmem:[%s5062_s2 + $0x1c8] sm:$0xff] }
 0x190   :  { %v1083_v63 = vmul.f32 %v1067_v60, %v1051_v4  ;;  %v915_v54 = vsub.f32 1.5, %v914_v58  ;;  %v3386_v60 = vld [vmem:[%s5062_s2 + $0x104] sm:$0xff] }
 0x191   :  { %v4131_v8 = vpop.eup %3463  ;;  %v4134_v36 = vsub.f32 %v3852_v29, %v775_v53  ;;  %v4136_v37 = vadd.f32 1e-05, %v863_v19  ;;  %1506 = vmatpush.bf16.msrb.mxu1 %v3386_v60 }
 0x192   :  { %v4139_v21 = vpop.eup %3465  ;;  %v916_v39 = vmul.f32 %v3462_v51, %v915_v54  ;;  %v922_v3 = vmul.f32 %v4131_v8, %v4099_v24  ;;  %v1115_v27 = vadd.f32 %v1099_v13, %v1083_v63  ;;  %vm928_vm11 = vweird.f32 %v4131_v8 }
 0x193   :  { %v902_v29 = vmul.f32 %v4139_v21, %v4101_v52  ;;  %3467 = vrsqrt.f32 %v4136_v37  ;;  %v807_v0 = vmul.f32 %v4134_v36, %v4134_v36  ;;  %vm908_vm12 = vweird.f32 %v4139_v21  ;;  %vm929_vm14 = vmor %vm927_vm13, %vm928_vm11  ;;  %v195_v52 = vld [vmem:[%s5062_s2 + $0x204] sm:$0x3] }
 0x194   :  { %v920_v44 = vsel %vm919_vm10, %v3462_v51, %v916_v39  ;;  %v923_v48 = vmul.f32 %v4131_v8, %v922_v3  ;;  %v1131_v50 = vpack.c.bf16 %v1115_v27, %v1115_v27  ;;  %v1102_v39 = vperm.slane %v3708_v42, 2  ;;  %vm909_vm0 = vmor %vm907_vm15, %vm908_vm12 }
 0x195   :  { %v1053_v23 = vmul.f32 %v920_v44, %v3821_v1  ;;  %v903_v57 = vmul.f32 %v4139_v21, %v902_v29  ;;  %v847_v35 = vsel %vm707_vm2, %v807_v0, 0.0  ;;  %v1100_v1 = vperm.slane %v3696_v33, 2 }
 0x196   :  { %v924_v61 = vmul.f32 0.5, %v923_v48  ;;  %v831_v51 = vpop.xlane.xlu2 %830  ;;  %v834_v62 = vpop.xlane.xlu0 %833  ;;  %2964 = vmatmul.msk.bf16.vlgmr.msra.gmra.mxu0 %vm707_vm2, %v1131_v50  ;;  %848 = vadd.xlane.f32.xlu0 %v847_v35  ;;  %v1074_v0 = vperm.slane %v3741_v7, 1  ;;  %v3407_v35 = vld [vmem:[%s5062_s2 + $0x1b8] sm:$0xff]  ;;  %vm937_vm1 = vweird.f32 %v4136_v37 }
 0x197   :  { %v1085_v45 = vmul.f32 %v1069_v14, %v1053_v23  ;;  %v904_v4 = vmul.f32 0.5, %v903_v57  ;;  %v865_v58 = vmul.f32 %v831_v51, %v3810_v47  ;;  %v866_v11 = vmul.f32 %v834_v62, %v3810_v47  ;;  %1674 = vmatpush.bf16.msra.mxu0 %v1671_v40 }
 0x198   :  { %v925_v13 = vsub.f32 1.5, %v924_v61  ;;  %v1073_v40 = vperm.slane %v3736_v6, 1  ;;  %v1103_v57 = vperm.slane %v3721_v56, 2  ;;  %v1711_v51 = vunpack.c.l.b16 %v195_v52 }
 0x199   :  { %v4169_v53 = vpop.eup %3467  ;;  %v905_v14 = vsub.f32 1.5, %v904_v4  ;;  %v4171_v19 = vadd.f32 1e-05, %v865_v58  ;;  %v4173_v20 = vadd.f32 1e-05, %v866_v11  ;;  %v1117_v63 = vadd.f32 %v1101_v49, %v1085_v45  ;;  %v3408_v49 = vld [vmem:[%s5062_s2 + $0x1c0] sm:$0xff] }
 0x19a   :  { %v926_v54 = vmul.f32 %v4131_v8, %v925_v13  ;;  %v932_v32 = vmul.f32 %v4169_v53, %v4136_v37  ;;  %vm938_vm3 = vweird.f32 %v4169_v53  ;;  %v1105_v58 = vperm.slane %v3736_v6, 2 }
 0x19b   :  { %v906_v38 = vmul.f32 %v4139_v21, %v905_v14  ;;  %3469 = vrsqrt.f32 %v4171_v19  ;;  %1675 = vmatpush.bf16.msra.mxu0 %v3409_v12  ;;  %v1133_v27 = vpack.c.bf16 %v1117_v63, %v1117_v63  ;;  %vm939_vm5 = vmor %vm937_vm1, %vm938_vm3  ;;  %v4243_v63 = vld [vmem:[%s5061_s3 + $0x28] sm:$0xff]  ;;  %vm957_vm6 = vweird.f32 %v4171_v19 }
 0x19c   :  { %v930_v24 = vsel %vm929_vm14, %v4131_v8, %v926_v54  ;;  %v933_v3 = vmul.f32 %v4169_v53, %v932_v32  ;;  %3471 = vrsqrt.f32 %v4173_v20  ;;  %v4199_v8 = vsel %vm1205_vm4, %v1834_v16, 0 }
 0x19d   :  { %v1054_v29 = vmul.f32 %v930_v24, %v3839_v15  ;;  %v910_v41 = vsel %vm909_vm0, %v4139_v21, %v906_v38  ;;  %3014 = vmatmul.msk.bf16.vlgmr.msra.gmra.mxu2 %vm707_vm2, %v1133_v27  ;;  %v1072_v54 = vperm.slane %v4243_v63, 1  ;;  %v1718_v32 = vpack.c.b16 %v1711_v51, %v1711_v51  ;;  %v260_v38 = vld [vmem:[%s5062_s2 + $0x308] sm:$0x3] }
 0x19e   :  { %v1052_v44 = vmul.f32 %v910_v41, %v3834_v10  ;;  %v934_v48 = vmul.f32 0.5, %v933_v3  ;;  %v843_v50 = vpop.xlane.xlu0 %842  ;;  %v828_v60 = vpop.xlane.xlu2 %827  ;;  %1790 = vmatpush.bf16.msra.mxu2 %v1787_v26  ;;  %v3421_v10 = vld [vmem:[%s5062_s2 + $0x230] sm:$0xff]  ;;  %v1106_v24 = vperm.slane %v3741_v7, 2  ;;  %vm967_vm8 = vweird.f32 %v4173_v20 }
 0x19f   :  { %v846_v23 = vpop.xlane.xlu1 %845  ;;  %v1086_v15 = vmul.f32 %v1070_v22, %v1054_v29  ;;  %v869_v21 = vmul.f32 %v843_v50, %v3810_v47  ;;  %1676 = vmatpush.bf16.msra.mxu0 %v3408_v49  ;;  %v864_v42 = vmul.f32 %v828_v60, %v3810_v47  ;;  %v3406_v26 = vld [vmem:[%s5062_s2 + $0x1b0] sm:$0xff]  ;;  %v3405_v60 = vld [vmem:[%s5062_s2 + $0x1a8] sm:$0xff] }
 0x1a0   :  { %v870_v61 = vmul.f32 %v846_v23, %v3810_v47  ;;  %v935_v62 = vsub.f32 1.5, %v934_v48  ;;  %v1084_v2 = vmul.f32 %v1068_v55, %v1052_v44  ;;  %v3420_v55 = vld [vmem:[%s5062_s2 + $0x228] sm:$0xff]  ;;  %v2001_v44 = vunpack.c.l.b16 %v260_v38  ;;  %v3418_v38 = vld [vmem:[%s5062_s2 + $0x218] sm:$0xff] }
 0x1a1   :  { %v4218_v22 = vpop.eup %3469  ;;  %v4222_v45 = vadd.f32 1e-05, %v869_v21  ;;  %v4232_v13 = vadd.f32 1e-05, %v864_v42  ;;  %v1118_v16 = vadd.f32 %v1102_v39, %v1086_v15  ;;  %v3419_v15 = vld [vmem:[%s5062_s2 + $0x220] sm:$0xff]  ;;  %v1729_v21 = vsel %vm1205_vm4, %v1718_v32, 0 }
 0x1a2   :  { %v4224_v4 = vadd.f32 1e-05, %v870_v61  ;;  %v4227_v11 = vpop.eup %3471  ;;  %v936_v12 = vmul.f32 %v4169_v53, %v935_v62  ;;  %v952_v37 = vmul.f32 %v4218_v22, %v4171_v19  ;;  %1791 = vmatpush.bf16.msra.mxu2 %v3421_v10  ;;  %v1116_v29 = vadd.f32 %v1100_v1, %v1084_v2  ;;  %v4288_v62 = vld [vmem:[%s5062_s2 + $0x33c] sm:$0x3] }
 0x1a3   :  { %v962_v14 = vmul.f32 %v4227_v11, %v4173_v20  ;;  %3473 = vrsqrt.f32 %v4222_v45  ;;  %1677 = vmatpush.bf16.msra.mxu0 %v3407_v35  ;;  %v1134_v41 = vpack.c.bf16 %v1118_v16, %v1118_v16  ;;  %vm958_vm7 = vweird.f32 %v4218_v22  ;;  %v3427_v35 = vld [vmem:[%s5062_s2 + $0x264] sm:$0xff]  ;;  %v3415_v19 = vld [vmem:[%s5062_s2 + $0x1fc] sm:$0xff] }
 0x1a4   :  { %v940_v39 = vsel %vm939_vm5, %v4169_v53, %v936_v12  ;;  %v953_v49 = vmul.f32 %v4218_v22, %v952_v37  ;;  %3475 = vrsqrt.f32 %v4232_v13  ;;  %v1132_v1 = vpack.c.bf16 %v1116_v29, %v1116_v29  ;;  %vm4304_vm10 = vmor %vm957_vm6, %vm958_vm7 }
 0x1a5   :  { %v1055_v3 = vmul.f32 %v940_v39, %v3850_v28  ;;  %v963_v27 = vmul.f32 %v4227_v11, %v962_v14  ;;  %3477 = vrsqrt.f32 %v4224_v4  ;;  %3039 = vmatmul.msk.bf16.vlgmr.msra.gmra.mxu3 %vm707_vm2, %v1134_v41  ;;  %vm968_vm9 = vweird.f32 %v4227_v11 }
 0x1a6   :  { %v954_v52 = vmul.f32 0.5, %v953_v49  ;;  %v840_v53 = vpop.xlane.xlu0 %839  ;;  %v837_v28 = vpop.xlane.xlu2 %836  ;;  %1792 = vmatpush.bf16.msra.mxu2 %v3420_v55  ;;  %1848 = vmatpush.bf16.msra.mxu3 %v4199_v8  ;;  %v2008_v37 = vpack.c.b16 %v2001_v44, %v2001_v44  ;;  %vm969_vm11 = vmor %vm967_vm8, %vm968_vm9  ;;  %v2059_v49 = vunpack.c.l.b16 %v4288_v62  ;;  %vm997_vm12 = vweird.f32 %v4222_v45 }
 0x1a7   :  { %v1087_v48 = vmul.f32 %v1071_v59, %v1055_v3  ;;  %v964_v50 = vmul.f32 0.5, %v963_v27  ;;  %v868_v23 = vmul.f32 %v840_v53, %v3810_v47  ;;  %1678 = vmatpush.bf16.msra.mxu0 %v3406_v26  ;;  %v867_v59 = vmul.f32 %v837_v28, %v3810_v47  ;;  %2989 = vmatmul.msk.bf16.vlgmr.msra.gmra.mxu1 %vm707_vm2, %v1132_v1  ;;  %v3404_v3 = vld [vmem:[%s5062_s2 + $0x1a0] sm:$0xff] }
 0x1a8   :  { %v955_v33 = vsub.f32 1.5, %v954_v52  ;;  %1732 = vmatpush.bf16.msra.mxu1 %v1729_v21  ;;  %v3426_v52 = vld [vmem:[%s5062_s2 + $0x25c] sm:$0xff]  ;;  %vm947_vm15 = vweird.f32 %v4232_v13  ;;  %vm1007_vm5 = vweird.f32 %v4224_v4 }
 0x1a9   :  { %v4275_v61 = vpop.eup %3473  ;;  %v965_v10 = vsub.f32 1.5, %v964_v50  ;;  %v4280_v51 = vadd.f32 1e-05, %v868_v23  ;;  %v4296_v8 = vadd.f32 1e-05, %v867_v59  ;;  %v1119_v26 = vadd.f32 %v1103_v57, %v1087_v48  ;;  %v3417_v23 = vld [vmem:[%s5062_s2 + $0x210] sm:$0xff] }
 0x1aa   :  { %v4290_v42 = vpop.eup %3475  ;;  %v956_v2 = vmul.f32 %v4218_v22, %v955_v33  ;;  %v992_v12 = vmul.f32 %v4275_v61, %v4222_v45  ;;  %1793 = vmatpush.bf16.msra.mxu2 %v3419_v15  ;;  %1849 = vmatpush.bf16.msra.mxu3 %v3427_v35  ;;  %vm998_vm13 = vweird.f32 %v4275_v61  ;;  %v3413_v45 = vld [vmem:[%s5062_s2 + $0x1ec] sm:$0xff] }
 0x1ab   :  { %v4298_v16 = vpop.eup %3477  ;;  %v966_v14 = vmul.f32 %v4227_v11, %v965_v10  ;;  %v942_v32 = vmul.f32 %v4290_v42, %v4232_v13  ;;  %3479 = vrsqrt.f32 %v4280_v51  ;;  %1679 = vmatpush.bf16.msra.mxu0 %v3405_v60  ;;  %v1135_v48 = vpack.c.bf16 %v1119_v26, %v1119_v26  ;;  %v3425_v60 = vld [vmem:[%s5062_s2 + $0x254] sm:$0xff]  ;;  %vm4374_vm0 = vmor %vm997_vm12, %vm998_vm13  ;;  %v3416_v13 = vld [vmem:[%s5062_s2 + $0x208] sm:$0xff] }
 0x1ac   :  { %v960_v39 = vsel %vm4304_vm10, %v4218_v22, %v956_v2  ;;  %v993_v56 = vmul.f32 %v4275_v61, %v992_v12  ;;  %v1002_v57 = vmul.f32 %v4298_v16, %v4224_v4  ;;  %3481 = vrsqrt.f32 %v4296_v8  ;;  %1733 = vmatpush.bf16.msra.mxu1 %v3415_v19  ;;  %v3445_v4 = vld [vmem:[%s5062_s2 + $0x300] sm:$0xff] }
 0x1ad   :  { %v1057_v27 = vmul.f32 %v960_v39, %v3857_v31  ;;  %v970_v22 = vsel %vm969_vm11, %v4227_v11, %v966_v14  ;;  %v943_v20 = vmul.f32 %v4290_v42, %v942_v32  ;;  %vm948_vm14 = vweird.f32 %v4290_v42  ;;  %3064 = vmatmul.msk.bf16.vlgmr.msrb.gmra.mxu0 %vm707_vm2, %v1135_v48 }
 0x1ae   :  { %v1058_v29 = vmul.f32 %v970_v22, %v3873_v46  ;;  %v994_v41 = vmul.f32 0.5, %v993_v56  ;;  %v1003_v53 = vmul.f32 %v4298_v16, %v1002_v57  ;;  %v855_v44 = vpop.xlane.xlu1 %854  ;;  %1794 = vmatpush.bf16.msra.mxu2 %v3418_v38  ;;  %v3414_v46 = vld [vmem:[%s5062_s2 + $0x1f4] sm:$0xff]  ;;  %1850 = vmatpush.bf16.msra.mxu3 %v3426_v52  ;;  %v2019_v14 = vsel %vm1205_vm4, %v2008_v37, 0  ;;  %vm949_vm1 = vmor %vm947_vm15, %vm948_vm14  ;;  %v3424_v57 = vld [vmem:[%s5062_s2 + $0x24c] sm:$0xff] }
 0x1af   :  { %v1089_v31 = vmul.f32 %v1073_v40, %v1057_v27  ;;  %v944_v11 = vmul.f32 0.5, %v943_v20  ;;  %v858_v50 = vpop.xlane.xlu2 %857  ;;  %1680 = vmatpush.bf16.msra.mxu0 %v3404_v3  ;;  %v873_v59 = vmul.f32 %v855_v44, %v3810_v47  ;;  %vm1008_vm3 = vweird.f32 %v4298_v16  ;;  %v4415_v22 = vld [vmem:[%s5061_s3 + $0x50] sm:$0xff] }
 0x1b0   :  { %v995_v28 = vsub.f32 1.5, %v994_v41  ;;  %v1004_v15 = vmul.f32 0.5, %v1003_v53  ;;  %v874_v40 = vmul.f32 %v858_v50, %v3810_v47  ;;  %v1090_v33 = vmul.f32 %v1074_v0, %v1058_v29  ;;  %1734 = vmatpush.bf16.msra.mxu1 %v3414_v46  ;;  %vm4428_vm6 = vmor %vm1007_vm5, %vm1008_vm3  ;;  %v3411_v50 = vld [vmem:[%s5062_s2 + $0x1dc] sm:$0xff]  ;;  %v3442_v29 = vld [vmem:[%s5062_s2 + $0x2e8] sm:$0xff] }
 0x1b1   :  { %v4355_v21 = vpop.eup %3479  ;;  %v945_v1 = vsub.f32 1.5, %v944_v11  ;;  %v1121_v10 = vadd.f32 %v1105_v58, %v1089_v31  ;;  %v4397_v39 = vadd.f32 1e-05, %v873_v59  ;;  %v1077_v20 = vperm.slane %v4415_v22, 1  ;;  %v3423_v31 = vld [vmem:[%s5062_s2 + $0x244] sm:$0xff] }
 0x1b2   :  { %v996_v35 = vmul.f32 %v4275_v61, %v995_v28  ;;  %v1005_v2 = vsub.f32 1.5, %v1004_v15  ;;  %v982_v0 = vmul.f32 %v4355_v21, %v4280_v51  ;;  %v4379_v6 = vadd.f32 1e-05, %v874_v40  ;;  %1795 = vmatpush.bf16.msra.mxu2 %v3417_v23  ;;  %v4388_v32 = vpop.eup %3481  ;;  %1851 = vmatpush.bf16.msra.mxu3 %v3425_v60  ;;  %v3422_v60 = vld [vmem:[%s5062_s2 + $0x23c] sm:$0xff] }
 0x1b3   :  { %v946_v55 = vmul.f32 %v4290_v42, %v945_v1  ;;  %v1137_v58 = vpack.c.bf16 %v1121_v10, %v1121_v10  ;;  %v972_v56 = vmul.f32 %v4388_v32, %v4296_v8  ;;  %v2066_v41 = vpack.c.b16 %v2059_v49, %v2059_v49 }
 0x1b4   :  { %v1000_v26 = vsel %vm4374_vm0, %v4275_v61, %v996_v35  ;;  %v1006_v38 = vmul.f32 %v4298_v16, %v1005_v2  ;;  %v983_v19 = vmul.f32 %v4355_v21, %v982_v0  ;;  %v1122_v61 = vadd.f32 %v1106_v24, %v1090_v33  ;;  %1735 = vmatpush.bf16.msra.mxu1 %v3413_v45  ;;  %v3444_v33 = vld [vmem:[%s5062_s2 + $0x2f8] sm:$0xff]  ;;  %v4497_v0 = vld [vmem:[%s5061_s3] sm:$0xff]  ;;  %v4510_v45 = vld [vmem:[%s5061_s3 + $0x48] sm:$0xff] }
 0x1b5   :  { %v950_v37 = vsel %vm949_vm1, %v4290_v42, %v946_v55  ;;  %3114 = vmatmul.msk.bf16.vlgmr.msrb.gmra.mxu2 %vm707_vm2, %v1137_v58  ;;  %3483 = vrsqrt.f32 %v4379_v6  ;;  %v1104_v42 = vperm.slane %v4243_v63, 2  ;;  %v1061_v7 = vmul.f32 %v1000_v26, %v3897_v17 }
 0x1b6   :  { %v1056_v3 = vmul.f32 %v950_v37, %v3892_v5  ;;  %v984_v27 = vmul.f32 0.5, %v983_v19  ;;  %v973_v24 = vmul.f32 %v4388_v32, %v972_v56  ;;  %1796 = vmatpush.bf16.msra.mxu2 %v3416_v13  ;;  %v3412_v5 = vld [vmem:[%s5062_s2 + $0x1e4] sm:$0xff]  ;;  %3485 = vrsqrt.f32 %v4397_v39  ;;  %1852 = vmatpush.bf16.msra.mxu3 %v3424_v57  ;;  %v3443_v37 = vld [vmem:[%s5062_s2 + $0x2f0] sm:$0xff] }
 0x1b7   :  { %vm988_vm7 = vweird.f32 %v4355_v21  ;;  %v1138_v44 = vpack.c.bf16 %v1122_v61, %v1122_v61  ;;  %vm987_vm8 = vweird.f32 %v4280_v51  ;;  %vm978_vm9 = vweird.f32 %v4388_v32  ;;  %v4459_v51 = vld [vmem:[%s5061_s3 + $0x58] sm:$0xff] }
 0x1b8   :  { %v1088_v52 = vmul.f32 %v1072_v54, %v1056_v3  ;;  %v985_v17 = vsub.f32 1.5, %v984_v27  ;;  %v1010_v54 = vsel %vm4428_vm6, %v4298_v16, %v1006_v38  ;;  %v974_v53 = vmul.f32 0.5, %v973_v24  ;;  %1736 = vmatpush.bf16.msra.mxu1 %v3412_v5  ;;  %vm4465_vm10 = vmor %vm987_vm8, %vm988_vm7  ;;  %v3451_v27 = vld [vmem:[%s5062_s2 + $0x334] sm:$0xff] }
 0x1b9   :  { %v1093_v49 = vmul.f32 %v1077_v20, %v1061_v7  ;;  %3139 = vmatmul.msk.bf16.vlgmr.msrb.gmra.mxu3 %vm707_vm2, %v1138_v44  ;;  %v1109_v16 = vperm.slane %v4415_v22, 2  ;;  %v1078_v46 = vperm.slane %v4459_v51, 1  ;;  %v1062_v28 = vmul.f32 %v1010_v54, %v3900_v18  ;;  %v4533_v7 = vld [vmem:[%s5061_s3 + $0x8] sm:$0xff]  ;;  %v4548_v44 = vld [vmem:[%s5061_s3 + $0x18] sm:$0xff] }
 0x1ba   :  { %2022 = vmatpush.bf16.msrb.mxu2 %v2019_v14  ;;  %v986_v11 = vmul.f32 %v4355_v21, %v985_v17  ;;  %v1120_v62 = vadd.f32 %v1104_v42, %v1088_v52  ;;  %v975_v48 = vsub.f32 1.5, %v974_v53  ;;  %vm977_vm11 = vweird.f32 %v4296_v8  ;;  %1853 = vmatpush.bf16.msra.mxu3 %v3423_v31  ;;  %v3410_v14 = vld [vmem:[%s5062_s2 + $0x1d4] sm:$0xff]  ;;  %v3450_v53 = vld [vmem:[%s5062_s2 + $0x32c] sm:$0xff] }
 0x1bb   :  { %v4454_v23 = vpop.eup %3483  ;;  %v3550_v10 = vmov 0   ;;  %vm979_vm12 = vmor %vm977_vm11, %vm978_vm9  ;;  %v2077_v8 = vsel %vm1205_vm4, %v2066_v41, 0  ;;  %v1125_v13 = vadd.f32 %v1109_v16, %v1093_v49  ;;  %v1076_v26 = vperm.slane %v4510_v45, 1 }
 0x1bc   :  { %v1136_v40 = vpack.c.bf16 %v1120_v62, %v1120_v62  ;;  %v990_v1 = vsel %vm4465_vm10, %v4355_v21, %v986_v11  ;;  %v976_v59 = vmul.f32 %v4388_v32, %v975_v48  ;;  %v1042_v18 = vmul.f32 %v4454_v23, %v4379_v6  ;;  %3454 = vset.pattern.permute.xlu2 %v3550_v10  ;;  %v4482_v35 = vpop.eup %3485  ;;  %v4487_v21 = vld [vmem:[%s5061_s3 + $0x40] sm:$0xff]  ;;  %v4558_v62 = vld [vmem:[%s5061_s3 + $0x70] sm:$0xff] }
 0x1bd   :  { %v1075_v2 = vperm.slane %v4487_v21, 1  ;;  %2638 = vperm.xlu2 %3454, %v4497_v0   ;;  %v1032_v58 = vmul.f32 %v4482_v35, %v4397_v39  ;;  %1737 = vmatpush.bf16.msra.mxu1 %v3411_v50  ;;  %v1107_v19 = vperm.slane %v4487_v21, 2  ;;  %v1094_v56 = vmul.f32 %v1078_v46, %v1062_v28  ;;  %v3449_v28 = vld [vmem:[%s5062_s2 + $0x324] sm:$0xff] }
 0x1be   :  { %2023 = vmatpush.bf16.msrb.mxu2 %v3445_v4  ;;  %3089 = vmatmul.msk.bf16.vlgmr.msrb.gmra.mxu1 %vm707_vm2, %v1136_v40  ;;  %v980_v12 = vsel %vm979_vm12, %v4388_v32, %v976_v59  ;;  %v1043_v55 = vmul.f32 %v4454_v23, %v1042_v18  ;;  %v1060_v32 = vmul.f32 %v990_v1, %v3920_v34  ;;  %v1110_v3 = vperm.slane %v4459_v51, 2  ;;  %v4524_v34 = vld [vmem:[%s5061_s3 + $0x10] sm:$0xff]  ;;  %v3448_v1 = vld [vmem:[%s5062_s2 + $0x31c] sm:$0xff] }
 0x1bf   :  { %v1059_v38 = vmul.f32 %v980_v12, %v3915_v25  ;;  %3456 = vset.pattern.permute.xlu1 %v3550_v10  ;;  %v1033_v57 = vmul.f32 %v4482_v35, %v1032_v58  ;;  %1854 = vmatpush.bf16.msra.mxu3 %v3422_v60  ;;  %v1141_v20 = vpack.c.bf16 %v1125_v13, %v1125_v13  ;;  %v1108_v17 = vperm.slane %v4510_v45, 2  ;;  %v4588_v59 = vld [vmem:[%s5061_s3 + $0x78] sm:$0xff]  ;;  %v4616_v13 = vld [vmem:[%s5061_s3 + $0x30] sm:$0xff] }
 0x1c0   :  { %v1044_v61 = vmul.f32 0.5, %v1043_v55  ;;  %2646 = vperm.xlu1 %3456, %v4524_v34   ;;  %3455 = vset.pattern.permute.xlu0 %v3550_v10  ;;  %v1092_v24 = vmul.f32 %v1076_v26, %v1060_v32  ;;  %vm1038_vm13 = vweird.f32 %v4482_v35  ;;  %v1126_v41 = vadd.f32 %v1110_v3, %v1094_v56  ;;  %v4595_v10 = vld [vmem:[%s5061_s3 + $0x20] sm:$0xff]  ;;  %v3446_v55 = vld [vmem:[%s5062_s2 + $0x30c] sm:$0xff]  ;;  %v247_v26 = vld [vmem:[%s5062_s2 + $0x2d4] sm:$0x3] }
 0x1c1   :  { %v1091_v25 = vmul.f32 %v1075_v2, %v1059_v38  ;;  %v1034_v42 = vmul.f32 0.5, %v1033_v57  ;;  %1738 = vmatpush.bf16.msra.mxu1 %v3410_v14  ;;  %2642 = vperm.xlu0 %3455, %v4533_v7   ;;  %vm1037_vm14 = vweird.f32 %v4397_v39  ;;  %vm1048_vm15 = vweird.f32 %v4454_v23  ;;  %v3441_v39 = vld [vmem:[%s5062_s2 + $0x2e0] sm:$0xff]  ;;  %v4629_v38 = vld [vmem:[%s5061_s3 + $0x68] sm:$0xff] }
 0x1c2   :  { %2024 = vmatpush.bf16.msrb.mxu2 %v3444_v33  ;;  %v1045_v5 = vsub.f32 1.5, %v1044_v61  ;;  %v1081_v49 = vperm.slane %v4558_v62, 1  ;;  %vm1039_vm0 = vmor %vm1037_vm14, %vm1038_vm13  ;;  %v1124_v48 = vadd.f32 %v1108_v17, %v1092_v24  ;;  %v1142_v50 = vpack.c.bf16 %v1126_v41, %v1126_v41  ;;  %v4636_v56 = vld [vmem:[%s5061_s3 + $0x60] sm:$0xff]  ;;  %v3439_v61 = vld [vmem:[%s5062_s2 + $0x2cc] sm:$0xff] }
 0x1c3   :  { %2080 = vmatpush.bf16.msrb.mxu3 %v2077_v8  ;;  %v1123_v52 = vadd.f32 %v1107_v19, %v1091_v25  ;;  %v1035_v4 = vsub.f32 1.5, %v1034_v42  ;;  %vm1047_vm1 = vweird.f32 %v4379_v6  ;;  %v1113_v15 = vperm.slane %v4558_v62, 2  ;;  %v3438_v57 = vld [vmem:[%s5062_s2 + $0x2c4] sm:$0xff]  ;;  %v234_v3 = vld [vmem:[%s5062_s2 + $0x2a0] sm:$0x3]  ;;  %v3436_v24 = vld [vmem:[%s5062_s2 + $0x2b4] sm:$0xff] }
 0x1c4   :  { %v1046_v11 = vmul.f32 %v4454_v23, %v1045_v5  ;;  %vm1049_vm3 = vmor %vm1047_vm1, %vm1048_vm15  ;;  %v1140_v6 = vpack.c.bf16 %v1124_v48, %v1124_v48  ;;  %v1114_v12 = vperm.slane %v4588_v59, 2  ;;  %v1943_v32 = vunpack.c.l.b16 %v247_v26  ;;  %v3433_v5 = vld [vmem:[%s5062_s2 + $0x298] sm:$0xff]  ;;  %v3434_v41 = vld [vmem:[%s5062_s2 + $0x2a4] sm:$0xff] }
 0x1c5   :  { %3214 = vmatmul.msk.bf16.vlgmr.msra.gmra.mxu2 %vm707_vm2, %v1141_v20  ;;  %v1139_v54 = vpack.c.bf16 %v1123_v52, %v1123_v52  ;;  %2650 = vperm.xlu2 %3454, %v4548_v44   ;;  %v1036_v31 = vmul.f32 %v4482_v35, %v1035_v4  ;;  %v1885_v25 = vunpack.c.l.b16 %v234_v3  ;;  %v3435_v52 = vld [vmem:[%s5062_s2 + $0x2ac] sm:$0xff]  ;;  %v1149_v3 = vperm.slane %v4524_v34, 3 }
 0x1c6   :  { %2025 = vmatpush.bf16.msrb.mxu2 %v3443_v37  ;;  %v1050_v40 = vsel %vm1049_vm3, %v4454_v23, %v1046_v11  ;;  %v1082_v23 = vperm.slane %v4588_v59, 1  ;;  %v1950_v19 = vpack.c.b16 %v1943_v32, %v1943_v32  ;;  %v3429_v11 = vld [vmem:[%s5062_s2 + $0x278] sm:$0xff] }
 0x1c7   :  { %2081 = vmatpush.bf16.msrb.mxu3 %v3451_v27  ;;  %3164 = vmatmul.msk.bf16.vlgmr.msra.gmra.mxu0 %vm707_vm2, %v1139_v54  ;;  %v1040_v16 = vsel %vm1039_vm0, %v4482_v35, %v1036_v31  ;;  %v1066_v18 = vmul.f32 %v1050_v40, %v3931_v9  ;;  %v4601_v35 = vld [vmem:[%s5061_s3 + $0x38] sm:$0xff]  ;;  %v1892_v42 = vpack.c.b16 %v1885_v25, %v1885_v25  ;;  %v3430_v31 = vld [vmem:[%s5062_s2 + $0x280] sm:$0xff]  ;;  %v1079_v25 = vperm.slane %v4636_v56, 1 }
 0x1c8   :  { %2658 = vperm.xlu1 %3456, %v4243_v63   ;;  %v1065_v46 = vmul.f32 %v1040_v16, %v3934_v43  ;;  %v3440_v43 = vld [vmem:[%s5062_s2 + $0x2d8] sm:$0xff]  ;;  %v1961_v37 = vsel %vm1205_vm4, %v1950_v19, 0  ;;  %v3428_v16 = vld [vmem:[%s5062_s2 + $0x270] sm:$0xff] }
 0x1c9   :  { %3239 = vmatmul.msk.bf16.vlgmr.msra.gmra.mxu3 %vm707_vm2, %v1142_v50  ;;  %2670 = vperm.xlu0 %3455, %v4487_v21   ;;  %v3447_v9 = vld [vmem:[%s5062_s2 + $0x314] sm:$0xff]  ;;  %v1098_v2 = vmul.f32 %v1082_v23, %v1066_v18  ;;  %v3437_v27 = vld [vmem:[%s5062_s2 + $0x2bc] sm:$0xff]  ;;  %v1903_v20 = vsel %vm1205_vm4, %v1892_v42, 0  ;;  %v1112_v18 = vperm.slane %v4629_v38, 2 }
 0x1ca   :  { %2026 = vmatpush.bf16.msrb.mxu2 %v3442_v29  ;;  %v1097_v33 = vmul.f32 %v1081_v49, %v1065_v46  ;;  %1964 = vmatpush.bf16.msrb.mxu1 %v1961_v37  ;;  %v3432_v29 = vld [vmem:[%s5062_s2 + $0x290] sm:$0xff] }
 0x1cb   :  { %2082 = vmatpush.bf16.msrb.mxu3 %v3450_v53  ;;  %v1130_v58 = vadd.f32 %v1114_v12, %v1098_v2  ;;  %1906 = vmatpush.bf16.msrb.mxu0 %v1903_v20  ;;  %v3431_v53 = vld [vmem:[%s5062_s2 + $0x288] sm:$0xff] }
 0x1cc   :  { %v1129_v60 = vadd.f32 %v1113_v15, %v1097_v33 }
 0x1cd   :  { %2654 = vperm.xlu2 %3454, %v4595_v10   ;;  %v1146_v14 = vpack.c.bf16 %v1130_v58, %v1130_v58 }
 0x1ce   :  { %2027 = vmatpush.bf16.msrb.mxu2 %v3441_v39  ;;  %3189 = vmatmul.msk.bf16.vlgmr.msra.gmra.mxu1 %vm707_vm2, %v1140_v6  ;;  %v1145_v8 = vpack.c.bf16 %v1129_v60, %v1129_v60  ;;  %v1080_v6 = vperm.slane %v4629_v38, 1 }
 0x1cf   :  { %2083 = vmatpush.bf16.msrb.mxu3 %v3449_v28  ;;  %1965 = vmatpush.bf16.msrb.mxu1 %v3439_v61 }
 0x1d0   :  { %2666 = vperm.xlu1 %3456, %v4601_v35   ;;  %1907 = vmatpush.bf16.msrb.mxu0 %v3433_v5 }
 0x1d1   :  { %2682 = vperm.xlu0 %3455, %v4459_v51  }
 0x1d2   :  { %2028 = vmatpush.bf16.msrb.mxu2 %v3440_v43 }
 0x1d3   :  { %2084 = vmatpush.bf16.msrb.mxu3 %v3448_v1  ;;  %1966 = vmatpush.bf16.msrb.mxu1 %v3438_v57  ;;  %v1147_v1 = vperm.slane %v4497_v0, 3 }
 0x1d4   :  { %1908 = vmatpush.bf16.msrb.mxu0 %v3432_v29 }
 0x1d5   :  { %3314 = vmatmul.msk.bf16.vlgmr.msrb.gmra.mxu2 %vm707_vm2, %v1145_v8  ;;  %2662 = vperm.xlu2 %3454, %v4616_v13  }
 0x1d7   :  { %2085 = vmatpush.bf16.msrb.mxu3 %v3447_v9  ;;  %1967 = vmatpush.bf16.msrb.mxu1 %v3437_v27 }
 0x1d8   :  { %2678 = vperm.xlu1 %3456, %v4415_v22   ;;  %1909 = vmatpush.bf16.msrb.mxu0 %v3431_v53 }
 0x1d9   :  { %2694 = vperm.xlu0 %3455, %v4558_v62  }
 0x1db   :  { %2086 = vmatpush.bf16.msrb.mxu3 %v3446_v55  ;;  %1968 = vmatpush.bf16.msrb.mxu1 %v3436_v24  ;;  %v1111_v24 = vperm.slane %v4636_v56, 2 }
 0x1dc   :  { %1910 = vmatpush.bf16.msrb.mxu0 %v3430_v31 }
 0x1dd   :  { %2674 = vperm.xlu2 %3454, %v4510_v45  }
 0x1de   :  { %3339 = vmatmul.msk.bf16.vlgmr.msrb.gmra.mxu3 %vm707_vm2, %v1146_v14 }
 0x1df   :  { %1969 = vmatpush.bf16.msrb.mxu1 %v3435_v52 }
 0x1e0   :  { %2690 = vperm.xlu1 %3456, %v4629_v38   ;;  %1911 = vmatpush.bf16.msrb.mxu0 %v3429_v11 }
 0x1e3   :  { %1970 = vmatpush.bf16.msrb.mxu1 %v3434_v41 }
 0x1e4   :  { %1912 = vmatpush.bf16.msrb.mxu0 %v3428_v16 }
 0x1e5   :  { %2686 = vperm.xlu2 %3454, %v4636_v56  }
 0x1fa   :  { %v852_v17 = vpop.xlane.xlu1 %851 }
 0x1fb   :  { %v872_v4 = vmul.f32 %v852_v17, %v3810_v47  ;;  %v1148_v17 = vperm.slane %v4533_v7, 3 }
 0x1fd   :  { %v888_v54 = vadd.f32 1e-05, %v872_v4 }
 0x1ff   :  { %3487 = vrsqrt.f32 %v888_v54  ;;  %vm1027_vm5 = vweird.f32 %v888_v54 }
 0x205   :  { %v3488_v49 = vpop.eup %3487 }
 0x206   :  { %v1022_v48 = vmul.f32 %v3488_v49, %v888_v54  ;;  %vm1028_vm4 = vweird.f32 %v3488_v49 }
 0x207   :  { %vm1029_vm6 = vmor %vm1027_vm5, %vm1028_vm4 }
 0x208   :  { %v1023_v39 = vmul.f32 %v3488_v49, %v1022_v48 }
 0x209   :  { %v849_v46 = vpop.xlane.xlu0 %848 }
 0x20a   :  { %v1024_v50 = vmul.f32 0.5, %v1023_v39  ;;  %v871_v28 = vmul.f32 %v849_v46, %v3810_v47  ;;  %v1151_v39 = vperm.slane %v4595_v10, 3 }
 0x20c   :  { %v1025_v15 = vsub.f32 1.5, %v1024_v50  ;;  %v887_v40 = vadd.f32 1e-05, %v871_v28 }
 0x20e   :  { %v1026_v33 = vmul.f32 %v3488_v49, %v1025_v15  ;;  %3489 = vrsqrt.f32 %v887_v40  ;;  %vm1017_vm9 = vweird.f32 %v887_v40 }
 0x210   :  { %v1030_v43 = vsel %vm1029_vm6, %v3488_v49, %v1026_v33 }
 0x211   :  { %v1064_v23 = vmul.f32 %v1030_v43, %v4082_v30 }
 0x213   :  { %v1096_v60 = vmul.f32 %v1080_v6, %v1064_v23  ;;  %v1218_v9 = vpop.f32.mrf.mxu0 }
 0x214   :  { %v1219_v2 = vadd.f32 %v1218_v9, %v1147_v1  ;;  %v3490_v8 = vpop.eup %3489  ;;  %v1153_v9 = vperm.slane %v4616_v13, 3 }
 0x215   :  { %v1128_v12 = vadd.f32 %v1112_v18, %v1096_v60  ;;  %v1012_v55 = vmul.f32 %v3490_v8, %v887_v40  ;;  %vm1018_vm8 = vweird.f32 %v3490_v8 }
 0x216   :  { %v2108_v58 = vmul.f32 0.01, %v1219_v2  ;;  %vm2092_vm7 = vcmp.gt.f32.partialorder %v1219_v2, 0.0  ;;  %vm1019_vm10 = vmor %vm1017_vm9, %vm1018_vm8 }
 0x217   :  { %v1144_v14 = vpack.c.bf16 %v1128_v12, %v1128_v12  ;;  %v1013_v26 = vmul.f32 %v3490_v8, %v1012_v55  ;;  %v1152_v12 = vperm.slane %v4243_v63, 3 }
 0x218   :  { %v4685_v32 = vsel %vm2092_vm7, %v1219_v2, %v2108_v58 }
 0x219   :  { %3289 = vmatmul.msk.bf16.vlgmr.msrb.gmra.mxu1 %vm707_vm2, %v1144_v14  ;;  %v2140_v19 = vsel %vm707_vm2, %v4685_v32, 0.0  ;;  %v1014_v30 = vmul.f32 0.5, %v1013_v26  ;;  %v1154_v14 = vperm.slane %v4601_v35, 3 }
 0x21a   :  { %2141 = vadd.xlane.f32.xlu2 %v2140_v19 }
 0x21b   :  { %v1220_v37 = vpop.f32.mrf.mxu0  ;;  %v1015_v61 = vsub.f32 1.5, %v1014_v30 }
 0x21d   :  { %v1016_v57 = vmul.f32 %v3490_v8, %v1015_v61 }
 0x21f   :  { %v1020_v27 = vsel %vm1019_vm10, %v3490_v8, %v1016_v57 }
 0x220   :  { %v1063_v42 = vmul.f32 %v1020_v27, %v4134_v36  ;;  %v1334_v20 = vpop.f32.mrf.mxu2  ;;  %v1150_v36 = vperm.slane %v4548_v44, 3 }
 0x221   :  { %v1335_v5 = vadd.f32 %v1334_v20, %v1149_v3  ;;  %v1155_v20 = vperm.slane %v4487_v21, 3 }
 0x222   :  { %v1095_v52 = vmul.f32 %v1079_v25, %v1063_v42 }
 0x223   :  { %v2110_v29 = vmul.f32 0.01, %v1335_v5  ;;  %vm2094_vm11 = vcmp.gt.f32.partialorder %v1335_v5, 0.0 }
 0x224   :  { %v1127_v4 = vadd.f32 %v1111_v24, %v1095_v52  ;;  %v1276_v54 = vpop.f32.mrf.mxu1 }
 0x225   :  { %v4695_v41 = vsel %vm2094_vm11, %v1335_v5, %v2110_v29  ;;  %v1277_v31 = vadd.f32 %v1276_v54, %v1148_v17  ;;  %v1157_v17 = vperm.slane %v4415_v22, 3 }
 0x226   :  { %v2146_v34 = vsel %vm707_vm2, %v4695_v41, 0.0  ;;  %v1143_v53 = vpack.c.bf16 %v1127_v4, %v1127_v4 }
 0x227   :  { %2147 = vadd.xlane.f32.xlu1 %v2146_v34  ;;  %v2109_v49 = vmul.f32 0.01, %v1277_v31  ;;  %vm2093_vm12 = vcmp.gt.f32.partialorder %v1277_v31, 0.0 }
 0x228   :  { %v1336_v11 = vpop.f32.mrf.mxu2  ;;  %3264 = vmatmul.msk.bf16.vlgmr.msrb.gmra.mxu0 %vm707_vm2, %v1143_v53  ;;  %v1392_v48 = vpop.f32.mrf.mxu3 }
 0x229   :  { %v1393_v16 = vadd.f32 %v1392_v48, %v1150_v36  ;;  %v4702_v50 = vsel %vm2093_vm12, %v1277_v31, %v2109_v49  ;;  %v1156_v31 = vperm.slane %v4510_v45, 3  ;;  %v1158_v49 = vperm.slane %v4459_v51, 3 }
 0x22a   :  { %v2143_v46 = vsel %vm707_vm2, %v4702_v50, 0.0  ;;  %v1450_v15 = vpop.f32.mrf.mxu0 }
 0x22b   :  { %v2111_v28 = vmul.f32 0.01, %v1393_v16  ;;  %2144 = vadd.xlane.f32.xlu0 %v2143_v46  ;;  %vm2095_vm13 = vcmp.gt.f32.partialorder %v1393_v16, 0.0  ;;  %v1451_v33 = vadd.f32 %v1450_v15, %v1151_v39 }
 0x22c   :  { %v1278_v40 = vpop.f32.mrf.mxu1 }
 0x22d   :  { %v4706_v6 = vsel %vm2095_vm13, %v1393_v16, %v2111_v28  ;;  %v2112_v43 = vmul.f32 0.01, %v1451_v33  ;;  %vm2096_vm14 = vcmp.gt.f32.partialorder %v1451_v33, 0.0 }
 0x22e   :  { %v2149_v1 = vsel %vm707_vm2, %v4706_v6, 0.0 }
 0x22f   :  { %2150 = vadd.xlane.f32.xlu2 %v2149_v1  ;;  %v4710_v18 = vsel %vm2096_vm14, %v1451_v33, %v2112_v43 }
 0x230   :  { %v1394_v23 = vpop.f32.mrf.mxu3  ;;  %v2152_v60 = vsel %vm707_vm2, %v4710_v18, 0.0 }
 0x232   :  { %v1452_v2 = vpop.f32.mrf.mxu0 }
 0x233   :  { %2153 = vadd.xlane.f32.xlu0 %v2152_v60  ;;  %v1161_v2 = vperm.slane %v4558_v62, 3 }
 0x238   :  { %v1566_v8 = vpop.f32.mrf.mxu2 }
 0x239   :  { %v1567_v55 = vadd.f32 %v1566_v8, %v1153_v9 }
 0x23b   :  { %v2114_v58 = vmul.f32 0.01, %v1567_v55  ;;  %v1508_v26 = vpop.f32.mrf.mxu1  ;;  %vm2098_vm15 = vcmp.gt.f32.partialorder %v1567_v55, 0.0 }
 0x23c   :  { %v1509_v19 = vadd.f32 %v1508_v26, %v1152_v12  ;;  %v1624_v37 = vpop.f32.mrf.mxu3 }
 0x23d   :  { %v4717_v30 = vsel %vm2098_vm15, %v1567_v55, %v2114_v58  ;;  %v1625_v3 = vadd.f32 %v1624_v37, %v1154_v14  ;;  %v4750_v58 = vpop.permute.xlu2 %2638 }
 0x23e   :  { %v2113_v61 = vmul.f32 0.01, %v1509_v19  ;;  %v2158_v57 = vsel %vm707_vm2, %v4717_v30, 0.0  ;;  %vm2097_vm0 = vcmp.gt.f32.partialorder %v1509_v19, 0.0 }
 0x23f   :  { %2159 = vadd.xlane.f32.xlu2 %v2158_v57  ;;  %v2115_v63 = vmul.f32 0.01, %v1625_v3  ;;  %vm2099_vm1 = vcmp.gt.f32.partialorder %v1625_v3, 0.0 }
 0x240   :  { %v1568_v25 = vpop.f32.mrf.mxu2  ;;  %v4721_v27 = vsel %vm2097_vm0, %v1509_v19, %v2113_v61 }
 0x241   :  { %v2155_v42 = vsel %vm707_vm2, %v4721_v27, 0.0  ;;  %v4726_v24 = vsel %vm2099_vm1, %v1625_v3, %v2115_v63  ;;  %v4762_v63 = vpop.permute.xlu0 %2642 }
 0x242   :  { %2156 = vadd.xlane.f32.xlu1 %v2155_v42  ;;  %v2161_v52 = vsel %vm707_vm2, %v4726_v24, 0.0 }
 0x243   :  { %v1510_v5 = vpop.f32.mrf.mxu1  ;;  %2162 = vadd.xlane.f32.xlu0 %v2161_v52 }
 0x244   :  { %v1682_v29 = vpop.f32.mrf.mxu0  ;;  %v1626_v4 = vpop.f32.mrf.mxu3 }
 0x245   :  { %v1683_v54 = vadd.f32 %v1682_v29, %v1155_v20  ;;  %v4756_v57 = vpop.permute.xlu2 %2650  ;;  %v1160_v29 = vperm.slane %v4629_v38, 3 }
 0x247   :  { %v2116_v34 = vmul.f32 0.01, %v1683_v54  ;;  %vm2100_vm3 = vcmp.gt.f32.partialorder %v1683_v54, 0.0 }
 0x248   :  { %v1798_v53 = vpop.f32.mrf.mxu2 }
 0x249   :  { %v1799_v36 = vadd.f32 %v1798_v53, %v1157_v17  ;;  %v4732_v11 = vsel %vm2100_vm3, %v1683_v54, %v2116_v34  ;;  %v4766_v20 = vpop.permute.xlu0 %2670 }
 0x24a   :  { %v2164_v48 = vsel %vm707_vm2, %v4732_v11, 0.0 }
 0x24b   :  { %v2118_v21 = vmul.f32 0.01, %v1799_v36  ;;  %v1740_v39 = vpop.f32.mrf.mxu1  ;;  %vm2102_vm4 = vcmp.gt.f32.partialorder %v1799_v36, 0.0  ;;  %2165 = vadd.xlane.f32.xlu1 %v2164_v48 }
 0x24c   :  { %v1741_v22 = vadd.f32 %v1740_v39, %v1156_v31  ;;  %v1684_v16 = vpop.f32.mrf.mxu0  ;;  %v1856_v28 = vpop.f32.mrf.mxu3 }
 0x24d   :  { %v4737_v46 = vsel %vm2102_vm4, %v1799_v36, %v2118_v21  ;;  %v1857_v40 = vadd.f32 %v1856_v28, %v1158_v49  ;;  %v4758_v25 = vpop.permute.xlu2 %2654  ;;  %v1159_v16 = vperm.slane %v4636_v56, 3 }
 0x24e   :  { %v2117_v15 = vmul.f32 0.01, %v1741_v22  ;;  %v2170_v45 = vsel %vm707_vm2, %v4737_v46, 0.0  ;;  %vm2101_vm5 = vcmp.gt.f32.partialorder %v1741_v22, 0.0 }
 0x24f   :  { %2171 = vadd.xlane.f32.xlu0 %v2170_v45  ;;  %v2119_v43 = vmul.f32 0.01, %v1857_v40  ;;  %vm2103_vm6 = vcmp.gt.f32.partialorder %v1857_v40, 0.0 }
 0x250   :  { %v1800_v33 = vpop.f32.mrf.mxu2  ;;  %v4741_v51 = vsel %vm2101_vm5, %v1741_v22, %v2117_v15 }
 0x251   :  { %v2167_v1 = vsel %vm707_vm2, %v4741_v51, 0.0  ;;  %v4745_v23 = vsel %vm2103_vm6, %v1857_v40, %v2119_v43  ;;  %v4770_v52 = vpop.permute.xlu0 %2682 }
 0x252   :  { %2168 = vadd.xlane.f32.xlu2 %v2167_v1  ;;  %v2173_v9 = vsel %vm707_vm2, %v4745_v23, 0.0 }
 0x253   :  { %v1742_v60 = vpop.f32.mrf.mxu1  ;;  %2174 = vadd.xlane.f32.xlu1 %v2173_v9 }
 0x254   :  { %v1858_v8 = vpop.f32.mrf.mxu3 }
 0x255   :  { %v4760_v62 = vpop.permute.xlu2 %2662 }
 0x258   :  { %v2030_v12 = vpop.f32.mrf.mxu2 }
 0x259   :  { %v2031_v55 = vadd.f32 %v2030_v12, %v1161_v2  ;;  %v4773_v54 = vpop.permute.xlu0 %2694 }
 0x25b   :  { %v2122_v14 = vmul.f32 0.01, %v2031_v55  ;;  %vm2106_vm7 = vcmp.gt.f32.partialorder %v2031_v55, 0.0 }
 0x25d   :  { %v4752_v26 = vsel %vm2106_vm7, %v2031_v55, %v2122_v14  ;;  %v4764_v42 = vpop.permute.xlu2 %2674 }
 0x25e   :  { %v2182_v19 = vsel %vm707_vm2, %v4752_v26, 0.0 }
 0x25f   :  { %2183 = vadd.xlane.f32.xlu1 %v2182_v19 }
 0x260   :  { %v2032_v61 = vpop.f32.mrf.mxu2 }
 0x261   :  { %v2088_v37 = vpop.f32.mrf.mxu3 }
 0x265   :  { %v4768_v5 = vpop.permute.xlu2 %2686 }
 0x269   :  { %v2090_v3 = vpop.f32.mrf.mxu3 }
 0x28d   :  { %v2142_v17 = vpop.xlane.xlu2 %2141 }
 0x28e   :  { %v2188_v53 = vmul.f32 %v2142_v17, %v3810_v47 }
 0x290   :  { %v4779_v21 = vsub.f32 %v4685_v32, %v2188_v53  ;;  %v1162_v32 = vperm.slane %v4588_v59, 3 }
 0x292   :  { %v2220_v38 = vmul.f32 %v4779_v21, %v4779_v21 }
 0x294   :  { %v2236_v15 = vsel %vm707_vm2, %v2220_v38, 0.0 }
 0x296   :  { %v1972_v4 = vpop.f32.mrf.mxu1 }
 0x297   :  { %v1973_v34 = vadd.f32 %v1972_v4, %v1160_v29  ;;  %v4812_v29 = vpop.permute.xlu1 %2646 }
 0x299   :  { %v2121_v31 = vmul.f32 0.01, %v1973_v34  ;;  %vm2105_vm8 = vcmp.gt.f32.partialorder %v1973_v34, 0.0 }
 0x29b   :  { %v4776_v36 = vsel %vm2105_vm8, %v1973_v34, %v2121_v31 }
 0x29c   :  { %v2179_v49 = vsel %vm707_vm2, %v4776_v36, 0.0 }
 0x29d   :  { %2180 = vadd.xlane.f32.xlu0 %v2179_v49 }
 0x29e   :  { %v1974_v48 = vpop.f32.mrf.mxu1  ;;  %v2145_v39 = vpop.xlane.xlu0 %2144 }
 0x29f   :  { %v2189_v22 = vmul.f32 %v2145_v39, %v3810_v47 }
 0x2a1   :  { %v4788_v28 = vsub.f32 %v4702_v50, %v2189_v22  ;;  %v2089_v50 = vadd.f32 %v2088_v37, %v1162_v32  ;;  %v4827_v22 = vpop.permute.xlu1 %2658 }
 0x2a2   :  { %v2151_v45 = vpop.xlane.xlu2 %2150 }
 0x2a3   :  { %v2191_v40 = vmul.f32 %v2151_v45, %v3810_v47  ;;  %v2221_v33 = vmul.f32 %v4788_v28, %v4788_v28  ;;  %v2123_v37 = vmul.f32 0.01, %v2089_v50  ;;  %vm2107_vm10 = vcmp.gt.f32.partialorder %v2089_v50, 0.0 }
 0x2a5   :  { %2237 = vadd.xlane.f32.xlu0 %v2236_v15  ;;  %v1914_v43 = vpop.f32.mrf.mxu0  ;;  %v4796_v60 = vsub.f32 %v4706_v6, %v2191_v40  ;;  %v2239_v56 = vsel %vm707_vm2, %v2221_v33, 0.0 }
 0x2a6   :  { %v1915_v1 = vadd.f32 %v1914_v43, %v1159_v16  ;;  %v2154_v9 = vpop.xlane.xlu0 %2153  ;;  %2240 = vadd.xlane.f32.xlu1 %v2239_v56 }
 0x2a7   :  { %v2192_v8 = vmul.f32 %v2154_v9, %v3810_v47  ;;  %v2223_v12 = vmul.f32 %v4796_v60, %v4796_v60 }
 0x2a8   :  { %v2120_v2 = vmul.f32 0.01, %v1915_v1  ;;  %vm2104_vm9 = vcmp.gt.f32.partialorder %v1915_v1, 0.0 }
 0x2a9   :  { %v4805_v14 = vsub.f32 %v4710_v18, %v2192_v8  ;;  %v2245_v19 = vsel %vm707_vm2, %v2223_v12, 0.0  ;;  %v4815_v18 = vsel %vm2107_vm10, %v2089_v50, %v2123_v37  ;;  %v4836_v40 = vpop.permute.xlu1 %2666 }
 0x2aa   :  { %v4802_v55 = vsel %vm2104_vm9, %v1915_v1, %v2120_v2  ;;  %v2185_v53 = vsel %vm707_vm2, %v4815_v18, 0.0 }
 0x2ab   :  { %v2176_v6 = vsel %vm707_vm2, %v4802_v55, 0.0  ;;  %v2224_v61 = vmul.f32 %v4805_v14, %v4805_v14 }
 0x2ac   :  { %2177 = vadd.xlane.f32.xlu2 %v2176_v6 }
 0x2ad   :  { %2246 = vadd.xlane.f32.xlu0 %v2245_v19  ;;  %v1916_v3 = vpop.f32.mrf.mxu0  ;;  %v2248_v17 = vsel %vm707_vm2, %v2224_v61, 0.0 }
 0x2ae   :  { %2249 = vadd.xlane.f32.xlu1 %v2248_v17 }
 0x2b2   :  { %v2160_v4 = vpop.xlane.xlu2 %2159 }
 0x2b3   :  { %v2194_v34 = vmul.f32 %v2160_v4, %v3810_v47 }
 0x2b4   :  { %2186 = vadd.xlane.f32.xlu2 %v2185_v53 }
 0x2b5   :  { %v4821_v31 = vsub.f32 %v4717_v30, %v2194_v34 }
 0x2b6   :  { %v2163_v48 = vpop.xlane.xlu0 %2162 }
 0x2b7   :  { %v2226_v49 = vmul.f32 %v4821_v31, %v4821_v31  ;;  %v2195_v38 = vmul.f32 %v2163_v48, %v3810_v47 }
 0x2b9   :  { %v2254_v39 = vsel %vm707_vm2, %v2226_v49, 0.0  ;;  %v4830_v16 = vsub.f32 %v4726_v24, %v2195_v38 }
 0x2ba   :  { %2255 = vadd.xlane.f32.xlu0 %v2254_v39 }
 0x2bb   :  { %v2227_v15 = vmul.f32 %v4830_v16, %v4830_v16 }
 0x2bd   :  { %v2257_v30 = vsel %vm707_vm2, %v2227_v15, 0.0 }
 0x2be   :  { %2258 = vadd.xlane.f32.xlu1 %v2257_v30 }
 0x2c2   :  { %v2172_v32 = vpop.xlane.xlu0 %2171 }
 0x2c3   :  { %v2198_v45 = vmul.f32 %v2172_v32, %v3810_v47 }
 0x2c5   :  { %v4839_v33 = vsub.f32 %v4737_v46, %v2198_v45  ;;  %v2169_v43 = vpop.xlane.xlu2 %2168  ;;  %v4852_v46 = vpop.permute.xlu1 %2678 }
 0x2c6   :  { %v2197_v1 = vmul.f32 %v2169_v43, %v3810_v47 }
 0x2c7   :  { %v2230_v24 = vmul.f32 %v4839_v33, %v4839_v33 }
 0x2c8   :  { %v4845_v56 = vsub.f32 %v4741_v51, %v2197_v1 }
 0x2c9   :  { %v2266_v50 = vsel %vm707_vm2, %v2230_v24, 0.0 }
 0x2ca   :  { %2267 = vadd.xlane.f32.xlu1 %v2266_v50  ;;  %v2229_v9 = vmul.f32 %v4845_v56, %v4845_v56 }
 0x2cc   :  { %v2263_v2 = vsel %vm707_vm2, %v2229_v9, 0.0  ;;  %2698 = vperm.xlu2 %3454, %v4588_v59  }
 0x2cd   :  { %2264 = vadd.xlane.f32.xlu0 %v2263_v2  ;;  %v4854_v8 = vpop.permute.xlu1 %2690 }
 0x2d5   :  { %v2148_v12 = vpop.xlane.xlu1 %2147 }
 0x2d6   :  { %v2190_v6 = vmul.f32 %v2148_v12, %v3810_v47 }
 0x2d8   :  { %v4858_v19 = vsub.f32 %v4695_v41, %v2190_v6 }
 0x2da   :  { %v2222_v61 = vmul.f32 %v4858_v19, %v4858_v19 }
 0x2dc   :  { %v2242_v17 = vsel %vm707_vm2, %v2222_v61, 0.0 }
 0x2dd   :  { %v2157_v51 = vpop.xlane.xlu1 %2156 }
 0x2de   :  { %v2193_v37 = vmul.f32 %v2157_v51, %v3810_v47 }
 0x2e0   :  { %v4864_v59 = vsub.f32 %v4721_v27, %v2193_v37 }
 0x2e2   :  { %v2225_v34 = vmul.f32 %v4864_v59, %v4864_v59 }
 0x2e4   :  { %v2251_v53 = vsel %vm707_vm2, %v2225_v34, 0.0 }
 0x2e5   :  { %v2166_v3 = vpop.xlane.xlu1 %2165 }
 0x2e6   :  { %v2196_v4 = vmul.f32 %v2166_v3, %v3810_v47 }
 0x2e8   :  { %v4871_v41 = vsub.f32 %v4732_v11, %v2196_v4 }
 0x2ea   :  { %v2228_v27 = vmul.f32 %v4871_v41, %v4871_v41 }
 0x2ec   :  { %v2260_v39 = vsel %vm707_vm2, %v2228_v27, 0.0 }
 0x2ed   :  { %v2175_v49 = vpop.xlane.xlu1 %2174 }
 0x2ee   :  { %v2199_v48 = vmul.f32 %v2175_v49, %v3810_v47 }
 0x2f0   :  { %v4878_v38 = vsub.f32 %v4745_v23, %v2199_v48 }
 0x2f2   :  { %v2231_v11 = vmul.f32 %v4878_v38, %v4878_v38 }
 0x2f4   :  { %v2269_v45 = vsel %vm707_vm2, %v2231_v11, 0.0 }
 0x2f5   :  { %2243 = vadd.xlane.f32.xlu2 %v2242_v17  ;;  %v2184_v15 = vpop.xlane.xlu1 %2183 }
 0x2f6   :  { %v2202_v30 = vmul.f32 %v2184_v15, %v3810_v47 }
 0x2f8   :  { %v4885_v32 = vsub.f32 %v4752_v26, %v2202_v30 }
 0x2fa   :  { %v2234_v23 = vmul.f32 %v4885_v32, %v4885_v32 }
 0x2fc   :  { %v2278_v50 = vsel %vm707_vm2, %v2234_v23, 0.0 }
 0x2fd   :  { %2252 = vadd.xlane.f32.xlu2 %v2251_v53 }
 0x305   :  { %2261 = vadd.xlane.f32.xlu2 %v2260_v39 }
 0x30d   :  { %2270 = vadd.xlane.f32.xlu2 %v2269_v45 }
 0x310   :  { %v2181_v43 = vpop.xlane.xlu0 %2180 }
 0x311   :  { %v2201_v1 = vmul.f32 %v2181_v43, %v3810_v47 }
 0x313   :  { %v4892_v24 = vsub.f32 %v4776_v36, %v2201_v1 }
 0x315   :  { %v2233_v9 = vmul.f32 %v4892_v24, %v4892_v24  ;;  %2279 = vadd.xlane.f32.xlu2 %v2278_v50 }
 0x317   :  { %v2275_v26 = vsel %vm707_vm2, %v2233_v9, 0.0 }
 0x318   :  { %2276 = vadd.xlane.f32.xlu1 %v2275_v26  ;;  %v2238_v2 = vpop.xlane.xlu0 %2237 }
 0x319   :  { %v2284_v12 = vmul.f32 %v2238_v2, %v3810_v47  ;;  %v2241_v51 = vpop.xlane.xlu1 %2240 }
 0x31a   :  { %v2285_v37 = vmul.f32 %v2241_v51, %v3810_v47 }
 0x31b   :  { %v2300_v6 = vadd.f32 1e-05, %v2284_v12 }
 0x31c   :  { %v2301_v61 = vadd.f32 1e-05, %v2285_v37 }
 0x31d   :  { %3491 = vrsqrt.f32 %v2300_v6  ;;  %vm2322_vm12 = vweird.f32 %v2300_v6 }
 0x31e   :  { %3493 = vrsqrt.f32 %v2301_v61  ;;  %vm2332_vm15 = vweird.f32 %v2301_v61 }
 0x31f   :  { %v2178_v36 = vpop.xlane.xlu2 %2177 }
 0x320   :  { %v2247_v3 = vpop.xlane.xlu0 %2246  ;;  %v2200_v17 = vmul.f32 %v2178_v36, %v3810_v47 }
 0x321   :  { %v2287_v4 = vmul.f32 %v2247_v3, %v3810_v47  ;;  %v2250_v27 = vpop.xlane.xlu1 %2249 }
 0x322   :  { %v4903_v53 = vsub.f32 %v4802_v55, %v2200_v17  ;;  %v2288_v39 = vmul.f32 %v2250_v27, %v3810_v47 }
 0x323   :  { %v3492_v34 = vpop.eup %3491  ;;  %v2303_v49 = vadd.f32 1e-05, %v2287_v4  ;;  %v2492_v4 = vperm.slane %v4497_v0, 4 }
 0x324   :  { %v2317_v48 = vmul.f32 %v3492_v34, %v2300_v6  ;;  %v2232_v15 = vmul.f32 %v4903_v53, %v4903_v53  ;;  %v3494_v11 = vpop.eup %3493  ;;  %v4908_v45 = vadd.f32 1e-05, %v2288_v39  ;;  %vm2323_vm11 = vweird.f32 %v3492_v34 }
 0x325   :  { %3495 = vrsqrt.f32 %v2303_v49  ;;  %v2327_v1 = vmul.f32 %v3494_v11, %v2301_v61  ;;  %vm2333_vm13 = vweird.f32 %v3494_v11  ;;  %vm2324_vm14 = vmor %vm2322_vm12, %vm2323_vm11  ;;  %v2524_v6 = vperm.slane %v4497_v0, 5 }
 0x326   :  { %v2318_v30 = vmul.f32 %v3492_v34, %v2317_v48  ;;  %v2272_v43 = vsel %vm707_vm2, %v2232_v15, 0.0  ;;  %3497 = vrsqrt.f32 %v4908_v45  ;;  %vm2334_vm0 = vmor %vm2332_vm15, %vm2333_vm13  ;;  %vm2352_vm3 = vweird.f32 %v2303_v49 }
 0x327   :  { %v2187_v50 = vpop.xlane.xlu2 %2186  ;;  %2273 = vadd.xlane.f32.xlu0 %v2272_v43  ;;  %v2328_v9 = vmul.f32 %v3494_v11, %v2327_v1  ;;  %vm2362_vm6 = vweird.f32 %v4908_v45 }
 0x328   :  { %v2319_v23 = vmul.f32 0.5, %v2318_v30  ;;  %v2203_v55 = vmul.f32 %v2187_v50, %v3810_v47 }
 0x329   :  { %v2329_v51 = vmul.f32 0.5, %v2328_v9 }
 0x32a   :  { %v2320_v26 = vsub.f32 1.5, %v2319_v23  ;;  %v4914_v12 = vsub.f32 %v4815_v18, %v2203_v55 }
 0x32b   :  { %v3496_v2 = vpop.eup %3495  ;;  %v2330_v48 = vsub.f32 1.5, %v2329_v51 }
 0x32c   :  { %v2321_v37 = vmul.f32 %v3492_v34, %v2320_v26  ;;  %v2347_v36 = vmul.f32 %v3496_v2, %v2303_v49  ;;  %v2235_v17 = vmul.f32 %v4914_v12, %v4914_v12  ;;  %v3498_v30 = vpop.eup %3497  ;;  %v2556_v26 = vperm.slane %v4497_v0, 6 }
 0x32d   :  { %v2256_v3 = vpop.xlane.xlu0 %2255  ;;  %v2331_v1 = vmul.f32 %v3494_v11, %v2330_v48  ;;  %v2357_v23 = vmul.f32 %v3498_v30, %v4908_v45  ;;  %vm2353_vm1 = vweird.f32 %v3496_v2  ;;  %v2557_v0 = vperm.slane %v4533_v7, 6 }
 0x32e   :  { %v2325_v27 = vsel %vm2324_vm14, %v3492_v34, %v2321_v37  ;;  %v2348_v39 = vmul.f32 %v3496_v2, %v2347_v36  ;;  %v2290_v15 = vmul.f32 %v2256_v3, %v3810_v47  ;;  %v2281_v18 = vsel %vm707_vm2, %v2235_v17, 0.0  ;;  %vm2354_vm4 = vmor %vm2352_vm3, %vm2353_vm1 }
 0x32f   :  { %v2476_v43 = vmul.f32 %v2325_v27, %v4779_v21  ;;  %2282 = vadd.xlane.f32.xlu0 %v2281_v18  ;;  %v2493_v34 = vperm.slane %v4533_v7, 4  ;;  %v2335_v51 = vsel %vm2334_vm0, %v3494_v11, %v2331_v1  ;;  %v2358_v37 = vmul.f32 %v3498_v30, %v2357_v23 }
 0x330   :  { %v2349_v50 = vmul.f32 0.5, %v2348_v39  ;;  %v4925_v55 = vadd.f32 1e-05, %v2290_v15  ;;  %v2477_v36 = vmul.f32 %v2335_v51, %v4788_v28  ;;  %v2525_v3 = vperm.slane %v4533_v7, 5 }
 0x331   :  { %v2508_v9 = vmul.f32 %v2492_v4, %v2476_v43  ;;  %v2259_v61 = vpop.xlane.xlu1 %2258  ;;  %v2359_v48 = vmul.f32 0.5, %v2358_v37  ;;  %v2495_v15 = vperm.slane %v4548_v44, 4  ;;  %vm2363_vm5 = vweird.f32 %v3498_v30 }
 0x332   :  { %v2350_v21 = vsub.f32 1.5, %v2349_v50  ;;  %3499 = vrsqrt.f32 %v4925_v55  ;;  %v2291_v39 = vmul.f32 %v2259_v61, %v3810_v47  ;;  %v2509_v4 = vmul.f32 %v2493_v34, %v2477_v36  ;;  %vm2364_vm7 = vmor %vm2362_vm6, %vm2363_vm5 }
 0x333   :  { %v2540_v17 = vadd.f32 %v2524_v6, %v2508_v9  ;;  %v2360_v18 = vsub.f32 1.5, %v2359_v48  ;;  %v2527_v49 = vperm.slane %v4548_v44, 5  ;;  %v2496_v9 = vperm.slane %v4595_v10, 4 }
 0x334   :  { %v2351_v27 = vmul.f32 %v3496_v2, %v2350_v21  ;;  %v2307_v1 = vadd.f32 1e-05, %v2291_v39  ;;  %v2541_v28 = vadd.f32 %v2525_v3, %v2509_v4  ;;  %v2528_v61 = vperm.slane %v4595_v10, 5 }
 0x335   :  { %v2572_v11 = vmul.f32 %v2556_v26, %v2540_v17  ;;  %v2361_v50 = vmul.f32 %v3498_v30, %v2360_v18  ;;  %v2560_v48 = vperm.slane %v4595_v10, 6  ;;  %vm2382_vm9 = vweird.f32 %v4925_v55 }
 0x336   :  { %v2355_v43 = vsel %vm2354_vm4, %v3496_v2, %v2351_v27  ;;  %3501 = vrsqrt.f32 %v2307_v1  ;;  %v2573_v34 = vmul.f32 %v2557_v0, %v2541_v28  ;;  %v2559_v2 = vperm.slane %v4548_v44, 6 }
 0x337   :  { %v2588_v23 = vsel %vm707_vm2, %v2572_v11, 0.0  ;;  %v2479_v6 = vmul.f32 %v2355_v43, %v4796_v60  ;;  %v2365_v51 = vsel %vm2364_vm7, %v3498_v30, %v2361_v50  ;;  %vm2392_vm12 = vweird.f32 %v2307_v1 }
 0x338   :  { %2589 = vadd.xlane.f32.xlu1 %v2588_v23  ;;  %v3500_v7 = vpop.eup %3499  ;;  %v2591_v60 = vsel %vm707_vm2, %v2573_v34, 0.0  ;;  %v2480_v21 = vmul.f32 %v2365_v51, %v4805_v14  ;;  %v2498_v34 = vperm.slane %v4616_v13, 4 }
 0x339   :  { %v2511_v26 = vmul.f32 %v2495_v15, %v2479_v6  ;;  %v2377_v37 = vmul.f32 %v3500_v7, %v4925_v55  ;;  %2592 = vadd.xlane.f32.xlu2 %v2591_v60  ;;  %vm2383_vm8 = vweird.f32 %v3500_v7  ;;  %v2562_v60 = vperm.slane %v4616_v13, 6 }
 0x33a   :  { %v2512_v17 = vmul.f32 %v2496_v9, %v2480_v21  ;;  %vm2384_vm10 = vmor %vm2382_vm9, %vm2383_vm8 }
 0x33b   :  { %v2543_v45 = vadd.f32 %v2527_v49, %v2511_v26  ;;  %v2378_v36 = vmul.f32 %v3500_v7, %v2377_v37  ;;  %v2530_v26 = vperm.slane %v4616_v13, 5 }
 0x33c   :  { %v3502_v39 = vpop.eup %3501  ;;  %v2544_v0 = vadd.f32 %v2528_v61, %v2512_v17  ;;  %v2499_v61 = vperm.slane %v4601_v35, 4  ;;  %v2531_v17 = vperm.slane %v4601_v35, 5 }
 0x33d   :  { %v2268_v3 = vpop.xlane.xlu1 %2267  ;;  %v2575_v27 = vmul.f32 %v2559_v2, %v2543_v45  ;;  %v2379_v4 = vmul.f32 0.5, %v2378_v36  ;;  %v2387_v30 = vmul.f32 %v3502_v39, %v2307_v1  ;;  %vm2393_vm11 = vweird.f32 %v3502_v39 }
 0x33e   :  { %v2294_v44 = vmul.f32 %v2268_v3, %v3810_v47  ;;  %v2576_v23 = vmul.f32 %v2560_v48, %v2544_v0  ;;  %vm2394_vm13 = vmor %vm2392_vm12, %vm2393_vm11  ;;  %v2563_v1 = vperm.slane %v4601_v35, 6  ;;  %v3539_v35 = vld [vmem:[%s5061_s3 + $0x50] sm:$0xff] }
 0x33f   :  { %v2597_v11 = vsel %vm707_vm2, %v2575_v27, 0.0  ;;  %v2380_v15 = vsub.f32 1.5, %v2379_v4  ;;  %v2388_v43 = vmul.f32 %v3502_v39, %v2387_v30 }
 0x340   :  { %v2310_v14 = vadd.f32 1e-05, %v2294_v44  ;;  %v2265_v18 = vpop.xlane.xlu0 %2264  ;;  %2598 = vadd.xlane.f32.xlu1 %v2597_v11  ;;  %v2600_v50 = vsel %vm707_vm2, %v2576_v23, 0.0  ;;  %v2502_v23 = vperm.slane %v3539_v35, 4 }
 0x341   :  { %v2293_v28 = vmul.f32 %v2265_v18, %v3810_v47  ;;  %v2381_v6 = vmul.f32 %v3500_v7, %v2380_v15  ;;  %v2389_v10 = vmul.f32 0.5, %v2388_v43  ;;  %2601 = vadd.xlane.f32.xlu2 %v2600_v50 }
 0x342   :  { %3503 = vrsqrt.f32 %v2310_v14  ;;  %vm2422_vm15 = vweird.f32 %v2310_v14 }
 0x343   :  { %v2309_v49 = vadd.f32 1e-05, %v2293_v28  ;;  %v2385_v9 = vsel %vm2384_vm10, %v3500_v7, %v2381_v6  ;;  %v2390_v2 = vsub.f32 1.5, %v2389_v10 }
 0x344   :  { %v2482_v51 = vmul.f32 %v2385_v9, %v4821_v31 }
 0x345   :  { %3505 = vrsqrt.f32 %v2309_v49  ;;  %v2391_v37 = vmul.f32 %v3502_v39, %v2390_v2  ;;  %vm2412_vm3 = vweird.f32 %v2309_v49 }
 0x346   :  { %v2514_v55 = vmul.f32 %v2498_v34, %v2482_v51  ;;  %v2534_v34 = vperm.slane %v3539_v35, 5  ;;  %v2566_v51 = vperm.slane %v3539_v35, 6 }
 0x347   :  { %v2395_v45 = vsel %vm2394_vm13, %v3502_v39, %v2391_v37 }
 0x348   :  { %v3504_v21 = vpop.eup %3503  ;;  %v2546_v7 = vadd.f32 %v2530_v26, %v2514_v55  ;;  %v2483_v3 = vmul.f32 %v2395_v45, %v4830_v16 }
 0x349   :  { %v2417_v36 = vmul.f32 %v3504_v21, %v2310_v14  ;;  %vm2423_vm14 = vweird.f32 %v3504_v21  ;;  %v3540_v14 = vld [vmem:[%s5061_s3 + $0x48] sm:$0xff] }
 0x34a   :  { %v2578_v4 = vmul.f32 %v2562_v60, %v2546_v7  ;;  %v2515_v44 = vmul.f32 %v2499_v61, %v2483_v3  ;;  %vm2424_vm0 = vmor %vm2422_vm15, %vm2423_vm14  ;;  %v2501_v9 = vperm.slane %v3540_v14, 4  ;;  %v2533_v55 = vperm.slane %v3540_v14, 5  ;;  %v4971_v3 = vpop.permute.xlu2 %2698 }
 0x34b   :  { %v3506_v48 = vpop.eup %3505  ;;  %v2418_v27 = vmul.f32 %v3504_v21, %v2417_v36  ;;  %v2565_v61 = vperm.slane %v3540_v14, 6 }
 0x34c   :  { %v2407_v31 = vmul.f32 %v3506_v48, %v2309_v49  ;;  %v2606_v13 = vsel %vm707_vm2, %v2578_v4, 0.0  ;;  %v2547_v11 = vadd.f32 %v2531_v17, %v2515_v44  ;;  %vm2413_vm1 = vweird.f32 %v3506_v48 }
 0x34d   :  { %v2419_v30 = vmul.f32 0.5, %v2418_v27  ;;  %2607 = vadd.xlane.f32.xlu1 %v2606_v13  ;;  %vm2414_vm4 = vmor %vm2412_vm3, %vm2413_vm1 }
 0x34e   :  { %v2408_v0 = vmul.f32 %v3506_v48, %v2407_v31  ;;  %v2579_v18 = vmul.f32 %v2563_v1, %v2547_v11 }
 0x34f   :  { %v2420_v39 = vsub.f32 1.5, %v2419_v30 }
 0x350   :  { %v2409_v15 = vmul.f32 0.5, %v2408_v0  ;;  %v2609_v28 = vsel %vm707_vm2, %v2579_v18, 0.0 }
 0x351   :  { %v2421_v16 = vmul.f32 %v3504_v21, %v2420_v39  ;;  %2610 = vadd.xlane.f32.xlu2 %v2609_v28  ;;  %v3541_v28 = vld [vmem:[%s5061_s3 + $0x10] sm:$0xff] }
 0x352   :  { %v2410_v43 = vsub.f32 1.5, %v2409_v15  ;;  %v2494_v35 = vperm.slane %v3541_v28, 4 }
 0x353   :  { %v2425_v6 = vsel %vm2424_vm0, %v3504_v21, %v2421_v16 }
 0x354   :  { %v2411_v10 = vmul.f32 %v3506_v48, %v2410_v43  ;;  %v2486_v50 = vmul.f32 %v2425_v6, %v4839_v33 }
 0x356   :  { %v2415_v26 = vsel %vm2414_vm4, %v3506_v48, %v2411_v10  ;;  %v2518_v2 = vmul.f32 %v2502_v23, %v2486_v50  ;;  %v2526_v50 = vperm.slane %v3541_v28, 5 }
 0x357   :  { %v2485_v37 = vmul.f32 %v2415_v26, %v4845_v56 }
 0x358   :  { %v2550_v60 = vadd.f32 %v2534_v34, %v2518_v2  ;;  %v2558_v2 = vperm.slane %v3541_v28, 6  ;;  %v3543_v28 = vld [vmem:[%s5061_s3 + $0x40] sm:$0xff] }
 0x359   :  { %v2517_v21 = vmul.f32 %v2501_v9, %v2485_v37 }
 0x35a   :  { %v2582_v45 = vmul.f32 %v2566_v51, %v2550_v60 }
 0x35b   :  { %v2549_v49 = vadd.f32 %v2533_v55, %v2517_v21 }
 0x35c   :  { %v2618_v33 = vsel %vm707_vm2, %v2582_v45, 0.0 }
 0x35d   :  { %2619 = vadd.xlane.f32.xlu2 %v2618_v33  ;;  %v2581_v36 = vmul.f32 %v2565_v61, %v2549_v49 }
 0x35f   :  { %v2615_v7 = vsel %vm707_vm2, %v2581_v36, 0.0 }
 0x360   :  { %2616 = vadd.xlane.f32.xlu1 %v2615_v7 }
 0x368   :  { %v2244_v17 = vpop.xlane.xlu2 %2243 }
 0x369   :  { %v2286_v48 = vmul.f32 %v2244_v17, %v3810_v47 }
 0x36b   :  { %v2302_v27 = vadd.f32 1e-05, %v2286_v48 }
 0x36d   :  { %3507 = vrsqrt.f32 %v2302_v27  ;;  %vm2342_vm6 = vweird.f32 %v2302_v27 }
 0x370   :  { %v2253_v56 = vpop.xlane.xlu2 %2252 }
 0x371   :  { %v2289_v4 = vmul.f32 %v2253_v56, %v3810_v47 }
 0x373   :  { %v3508_v31 = vpop.eup %3507  ;;  %v2305_v44 = vadd.f32 1e-05, %v2289_v4 }
 0x374   :  { %v2337_v1 = vmul.f32 %v3508_v31, %v2302_v27  ;;  %vm2343_vm5 = vweird.f32 %v3508_v31 }
 0x375   :  { %3509 = vrsqrt.f32 %v2305_v44  ;;  %vm2344_vm7 = vmor %vm2342_vm6, %vm2343_vm5  ;;  %vm2372_vm9 = vweird.f32 %v2305_v44 }
 0x376   :  { %v2338_v30 = vmul.f32 %v3508_v31, %v2337_v1 }
 0x378   :  { %v2339_v13 = vmul.f32 0.5, %v2338_v30  ;;  %v2262_v0 = vpop.xlane.xlu2 %2261 }
 0x379   :  { %v2292_v11 = vmul.f32 %v2262_v0, %v3810_v47 }
 0x37a   :  { %v2340_v39 = vsub.f32 1.5, %v2339_v13 }
 0x37b   :  { %v3510_v15 = vpop.eup %3509  ;;  %v2308_v18 = vadd.f32 1e-05, %v2292_v11 }
 0x37c   :  { %v2341_v16 = vmul.f32 %v3508_v31, %v2340_v39  ;;  %v2367_v43 = vmul.f32 %v3510_v15, %v2305_v44  ;;  %vm2373_vm8 = vweird.f32 %v3510_v15 }
 0x37d   :  { %3511 = vrsqrt.f32 %v2308_v18  ;;  %vm2374_vm10 = vmor %vm2372_vm9, %vm2373_vm8  ;;  %vm2402_vm12 = vweird.f32 %v2308_v18 }
 0x37e   :  { %v2345_v23 = vsel %vm2344_vm7, %v3508_v31, %v2341_v16  ;;  %v2368_v6 = vmul.f32 %v3510_v15, %v2367_v43 }
 0x37f   :  { %v2478_v10 = vmul.f32 %v2345_v23, %v4858_v19  ;;  %v3542_v19 = vld [vmem:[%s5061_s3 + $0x28] sm:$0xff] }
 0x380   :  { %v2369_v34 = vmul.f32 0.5, %v2368_v6  ;;  %v2271_v14 = vpop.xlane.xlu2 %2270  ;;  %v2497_v49 = vperm.slane %v3542_v19, 4  ;;  %v2529_v48 = vperm.slane %v3542_v19, 5  ;;  %v2561_v44 = vperm.slane %v3542_v19, 6 }
 0x381   :  { %v2295_v9 = vmul.f32 %v2271_v14, %v3810_v47  ;;  %v2510_v26 = vmul.f32 %v2494_v35, %v2478_v10  ;;  %v2500_v35 = vperm.slane %v3543_v28, 4 }
 0x382   :  { %v2370_v51 = vsub.f32 1.5, %v2369_v34  ;;  %v2532_v34 = vperm.slane %v3543_v28, 5 }
 0x383   :  { %v3512_v37 = vpop.eup %3511  ;;  %v2311_v55 = vadd.f32 1e-05, %v2295_v9  ;;  %v2542_v60 = vadd.f32 %v2526_v50, %v2510_v26  ;;  %v2564_v9 = vperm.slane %v3543_v28, 6 }
 0x384   :  { %v2371_v21 = vmul.f32 %v3510_v15, %v2370_v51  ;;  %v2397_v61 = vmul.f32 %v3512_v37, %v2308_v18  ;;  %vm2403_vm11 = vweird.f32 %v3512_v37 }
 0x385   :  { %3513 = vrsqrt.f32 %v2311_v55  ;;  %v2574_v45 = vmul.f32 %v2558_v2, %v2542_v60  ;;  %vm2404_vm13 = vmor %vm2402_vm12, %vm2403_vm11  ;;  %vm2432_vm15 = vweird.f32 %v2311_v55 }
 0x386   :  { %v2375_v33 = vsel %vm2374_vm10, %v3510_v15, %v2371_v21  ;;  %v2398_v36 = vmul.f32 %v3512_v37, %v2397_v61 }
 0x387   :  { %v2594_v7 = vsel %vm707_vm2, %v2574_v45, 0.0  ;;  %v2481_v17 = vmul.f32 %v2375_v33, %v4864_v59  ;;  %v3544_v45 = vld [vmem:[%s5061_s3 + $0x58] sm:$0xff] }
 0x388   :  { %v2399_v27 = vmul.f32 0.5, %v2398_v36  ;;  %2595 = vadd.xlane.f32.xlu0 %v2594_v7  ;;  %v2280_v56 = vpop.xlane.xlu2 %2279 }
 0x389   :  { %v2298_v4 = vmul.f32 %v2280_v56, %v3810_v47  ;;  %v2513_v31 = vmul.f32 %v2497_v49, %v2481_v17  ;;  %v2535_v17 = vperm.slane %v3544_v45, 5  ;;  %v2567_v56 = vperm.slane %v3544_v45, 6 }
 0x38a   :  { %v2400_v1 = vsub.f32 1.5, %v2399_v27 }
 0x38b   :  { %v2277_v30 = vpop.xlane.xlu1 %2276  ;;  %v3514_v13 = vpop.eup %3513  ;;  %v2314_v0 = vadd.f32 1e-05, %v2298_v4  ;;  %v2545_v39 = vadd.f32 %v2529_v48, %v2513_v31 }
 0x38c   :  { %v2297_v11 = vmul.f32 %v2277_v30, %v3810_v47  ;;  %v2401_v15 = vmul.f32 %v3512_v37, %v2400_v1  ;;  %v2427_v16 = vmul.f32 %v3514_v13, %v2311_v55  ;;  %vm2433_vm14 = vweird.f32 %v3514_v13 }
 0x38d   :  { %3515 = vrsqrt.f32 %v2314_v0  ;;  %v2577_v43 = vmul.f32 %v2561_v44, %v2545_v39  ;;  %vm2434_vm0 = vmor %vm2432_vm15, %vm2433_vm14  ;;  %vm2462_vm3 = vweird.f32 %v2314_v0  ;;  %vm2832_vm14 = vcmask 1042434  }
 0x38e   :  { %v2313_v59 = vadd.f32 1e-05, %v2297_v11  ;;  %v2405_v23 = vsel %vm2404_vm13, %v3512_v37, %v2401_v15  ;;  %v2428_v6 = vmul.f32 %v3514_v13, %v2427_v16  ;;  %v3545_v15 = vld [vmem:[%s5061_s3 + $0x70] sm:$0xff]  ;;  %vm2834_vm15 = vcmask 1043459  }
 0x38f   :  { %v2603_v10 = vsel %vm707_vm2, %v2577_v43, 0.0  ;;  %v2484_v50 = vmul.f32 %v2405_v23, %v4871_v41  ;;  %v2503_v41 = vperm.slane %v3544_v45, 4  ;;  %v2506_v16 = vperm.slane %v3545_v15, 4 }
 0x390   :  { %3517 = vrsqrt.f32 %v2313_v59  ;;  %v2429_v14 = vmul.f32 0.5, %v2428_v6  ;;  %2604 = vadd.xlane.f32.xlu0 %v2603_v10  ;;  %vm2452_vm6 = vweird.f32 %v2313_v59  ;;  %v3546_v6 = vld [vmem:[%s5061_s3 + $0x68] sm:$0xff] }
 0x391   :  { %v2516_v18 = vmul.f32 %v2500_v35, %v2484_v50  ;;  %v2538_v35 = vperm.slane %v3545_v15, 5  ;;  %v2505_v10 = vperm.slane %v3546_v6, 4 }
 0x392   :  { %v2430_v26 = vsub.f32 1.5, %v2429_v14  ;;  %v2570_v14 = vperm.slane %v3545_v15, 6 }
 0x393   :  { %v3516_v2 = vpop.eup %3515  ;;  %v2548_v51 = vadd.f32 %v2532_v34, %v2516_v18 }
 0x394   :  { %v2431_v60 = vmul.f32 %v3514_v13, %v2430_v26  ;;  %v2457_v21 = vmul.f32 %v3516_v2, %v2314_v0  ;;  %vm2463_vm1 = vweird.f32 %v3516_v2 }
 0x395   :  { %v2580_v37 = vmul.f32 %v2564_v9, %v2548_v51  ;;  %vm2464_vm5 = vmor %vm2462_vm3, %vm2463_vm1  ;;  %v2537_v9 = vperm.slane %v3546_v6, 5  ;;  %vm2838_vm1 = vcmask 1045509   ;;  %vm2840_vm3 = vcmask 1046534  }
 0x396   :  { %v3518_v61 = vpop.eup %3517  ;;  %v2435_v19 = vsel %vm2434_vm0, %v3514_v13, %v2431_v60  ;;  %v2458_v49 = vmul.f32 %v3516_v2, %v2457_v21  ;;  %v2569_v60 = vperm.slane %v3546_v6, 6  ;;  %vm2836_vm0 = vcmask 1044484  }
 0x397   :  { %v2447_v33 = vmul.f32 %v3518_v61, %v2313_v59  ;;  %v2612_v36 = vsel %vm707_vm2, %v2580_v37, 0.0  ;;  %v2487_v7 = vmul.f32 %v2435_v19, %v4878_v38  ;;  %vm2453_vm4 = vweird.f32 %v3518_v61 }
 0x398   :  { %v2459_v48 = vmul.f32 0.5, %v2458_v49  ;;  %2613 = vadd.xlane.f32.xlu0 %v2612_v36  ;;  %vm2454_vm7 = vmor %vm2452_vm6, %vm2453_vm4  ;;  %vm2842_vm4 = vcmask 1047559  }
 0x399   :  { %v2448_v27 = vmul.f32 %v3518_v61, %v2447_v33  ;;  %v2519_v55 = vmul.f32 %v2503_v41, %v2487_v7 }
 0x39a   :  { %v2460_v4 = vsub.f32 1.5, %v2459_v48  ;;  %v2274_v44 = vpop.xlane.xlu0 %2273  ;;  %v3547_v48 = vld [vmem:[%s5061_s3 + $0x60] sm:$0xff] }
 0x39b   :  { %v2449_v31 = vmul.f32 0.5, %v2448_v27  ;;  %v2296_v1 = vmul.f32 %v2274_v44, %v3810_v47  ;;  %v2551_v30 = vadd.f32 %v2535_v17, %v2519_v55  ;;  %v2504_v27 = vperm.slane %v3547_v48, 4 }
 0x39c   :  { %v2461_v13 = vmul.f32 %v3516_v2, %v2460_v4 }
 0x39d   :  { %v2450_v11 = vsub.f32 1.5, %v2449_v31  ;;  %v2312_v39 = vadd.f32 1e-05, %v2296_v1  ;;  %v2583_v38 = vmul.f32 %v2567_v56, %v2551_v30  ;;  %v2536_v31 = vperm.slane %v3547_v48, 5 }
 0x39e   :  { %v2465_v43 = vsel %vm2464_vm5, %v3516_v2, %v2461_v13  ;;  %v2568_v30 = vperm.slane %v3547_v48, 6  ;;  %v2708_v48 = vperm.slane %v4766_v20, 7  ;;  %v2712_v20 = vperm.slane %v4768_v5, 7 }
 0x39f   :  { %v2451_v28 = vmul.f32 %v3518_v61, %v2450_v11  ;;  %3519 = vrsqrt.f32 %v2312_v39  ;;  %v2621_v23 = vsel %vm707_vm2, %v2583_v38, 0.0  ;;  %v2490_v0 = vmul.f32 %v2465_v43, %v4885_v32 }
 0x3a0   :  { %2622 = vadd.xlane.f32.xlu0 %v2621_v23  ;;  %vm2442_vm9 = vweird.f32 %v2312_v39  ;;  %vm2853_vm5 = vcmask 64512  }
 0x3a1   :  { %v2455_v50 = vsel %vm2454_vm7, %v3518_v61, %v2451_v28  ;;  %v2522_v34 = vmul.f32 %v2506_v16, %v2490_v0  ;;  %v3548_v16 = vld [vmem:[%s5061_s3 + $0x78] sm:$0xff]  ;;  %v2701_v28 = vperm.slane %v4762_v63, 7 }
 0x3a2   :  { %v2489_v18 = vmul.f32 %v2455_v50, %v4892_v24  ;;  %v2283_v59 = vpop.xlane.xlu0 %2282  ;;  %v2507_v43 = vperm.slane %v3548_v16, 4  ;;  %v2539_v0 = vperm.slane %v3548_v16, 5  ;;  %v2571_v50 = vperm.slane %v3548_v16, 6 }
 0x3a3   :  { %v2299_v26 = vmul.f32 %v2283_v59, %v3810_v47  ;;  %v2554_v2 = vadd.f32 %v2538_v35, %v2522_v34 }
 0x3a4   :  { %v2521_v51 = vmul.f32 %v2505_v10, %v2489_v18 }
 0x3a5   :  { %v3520_v21 = vpop.eup %3519  ;;  %v2315_v32 = vadd.f32 1e-05, %v2299_v26  ;;  %v2586_v37 = vmul.f32 %v2570_v14, %v2554_v2  ;;  %v2707_v2 = vperm.slane %v4836_v40, 7  ;;  %v2706_v40 = vperm.slane %v4760_v62, 7 }
 0x3a6   :  { %v2553_v45 = vadd.f32 %v2537_v9, %v2521_v51  ;;  %v2437_v41 = vmul.f32 %v3520_v21, %v2312_v39  ;;  %vm2443_vm8 = vweird.f32 %v3520_v21  ;;  %v2704_v9 = vperm.slane %v4758_v25, 7 }
 0x3a7   :  { %3521 = vrsqrt.f32 %v2315_v32  ;;  %v2630_v61 = vsel %vm707_vm2, %v2586_v37, 0.0  ;;  %vm2444_vm10 = vmor %vm2442_vm9, %vm2443_vm8  ;;  %vm2472_vm12 = vweird.f32 %v2315_v32  ;;  %v2710_v51 = vperm.slane %v4852_v46, 7 }
 0x3a8   :  { %v2585_v19 = vmul.f32 %v2569_v60, %v2553_v45  ;;  %v2438_v49 = vmul.f32 %v3520_v21, %v2437_v41  ;;  %2631 = vadd.xlane.f32.xlu0 %v2630_v61  ;;  %v2700_v37 = vperm.slane %v4750_v58, 7  ;;  %v2703_v41 = vperm.slane %v4756_v57, 7 }
 0x3a9   :  { %v2709_v46 = vperm.slane %v4764_v42, 7 }
 0x3aa   :  { %v2627_v24 = vsel %vm707_vm2, %v2585_v19, 0.0  ;;  %v2439_v33 = vmul.f32 0.5, %v2438_v49 }
 0x3ab   :  { %2628 = vadd.xlane.f32.xlu2 %v2627_v24 }
 0x3ac   :  { %v2440_v36 = vsub.f32 1.5, %v2439_v33  ;;  %v2593_v11 = vpop.xlane.xlu2 %2592 }
 0x3ad   :  { %v3522_v47 = vpop.eup %3521  ;;  %v2733_v6 = vadd.f32 %v2701_v28, %v2593_v11 }
 0x3ae   :  { %v2441_v7 = vmul.f32 %v3520_v21, %v2440_v36  ;;  %v2467_v17 = vmul.f32 %v3522_v47, %v2315_v32  ;;  %vm2473_vm11 = vweird.f32 %v3522_v47  ;;  %v2590_v32 = vpop.xlane.xlu1 %2589  ;;  %v2702_v36 = vperm.slane %v4812_v29, 7 }
 0x3af   :  { %vm2474_vm13 = vmor %vm2472_vm12, %vm2473_vm11  ;;  %v2732_v45 = vadd.f32 %v2700_v37, %v2590_v32  ;;  %v2714_v29 = vperm.slane %v4773_v54, 7 }
 0x3b0   :  { %v2445_v55 = vsel %vm2444_vm10, %v3520_v21, %v2441_v7  ;;  %v2468_v56 = vmul.f32 %v3522_v47, %v2467_v17  ;;  %v2705_v7 = vperm.slane %v4827_v22, 7 }
 0x3b1   :  { %v2488_v4 = vmul.f32 %v2445_v55, %v4903_v53  ;;  %v2711_v55 = vperm.slane %v4770_v52, 7  ;;  %v2715_v52 = vperm.slane %v4971_v3, 7 }
 0x3b2   :  { %v2469_v44 = vmul.f32 0.5, %v2468_v56 }
 0x3b3   :  { %v2520_v1 = vmul.f32 %v2504_v27, %v2488_v4 }
 0x3b4   :  { %v2470_v13 = vsub.f32 1.5, %v2469_v44  ;;  %v2602_v14 = vpop.xlane.xlu2 %2601 }
 0x3b5   :  { %v2552_v38 = vadd.f32 %v2536_v31, %v2520_v1  ;;  %v2736_v26 = vadd.f32 %v2704_v9, %v2602_v14  ;;  %v2713_v31 = vperm.slane %v4854_v8, 7 }
 0x3b6   :  { %v2471_v39 = vmul.f32 %v3522_v47, %v2470_v13  ;;  %v2599_v25 = vpop.xlane.xlu1 %2598 }
 0x3b7   :  { %v2584_v15 = vmul.f32 %v2568_v30, %v2552_v38  ;;  %v2735_v61 = vadd.f32 %v2703_v41, %v2599_v25 }
 0x3b8   :  { %v2475_v53 = vsel %vm2474_vm13, %v3522_v47, %v2471_v39 }
 0x3b9   :  { %v2624_v35 = vsel %vm707_vm2, %v2584_v15, 0.0  ;;  %v2491_v23 = vmul.f32 %v2475_v53, %v4914_v12  ;;  %v2812_v15 = vlaneseq }
 0x3ba   :  { %2625 = vadd.xlane.f32.xlu1 %v2624_v35 }
 0x3bb   :  { %v2523_v10 = vmul.f32 %v2507_v43, %v2491_v23  ;;  %v2813_v8 = vand.u32 127, %v2812_v15 }
 0x3bc   :  { %2768 = vperm.xlu0 %3455, %v2733_v6  }
 0x3bd   :  { %v2555_v34 = vadd.f32 %v2539_v0, %v2523_v10 }
 0x3bf   :  { %v2587_v18 = vmul.f32 %v2571_v50, %v2555_v34 }
 0x3c0   :  { %v2608_v19 = vpop.xlane.xlu1 %2607 }
 0x3c1   :  { %v2633_v59 = vsel %vm707_vm2, %v2587_v18, 0.0  ;;  %v2738_v49 = vadd.f32 %v2706_v40, %v2608_v19  ;;  %vm2830_vm2 = vcmask 1041409  }
 0x3c2   :  { %2634 = vadd.xlane.f32.xlu1 %v2633_v59 }
 0x3c4   :  { %2777 = vperm.xlu0 %3455, %v2736_v26   ;;  %v2611_v63 = vpop.xlane.xlu2 %2610 }
 0x3c5   :  { %v2739_v12 = vadd.f32 %v2707_v2, %v2611_v63 }
 0x3cc   :  { %2786 = vperm.xlu0 %3455, %v2739_v12  }
 0x3d0   :  { %v2620_v60 = vpop.xlane.xlu2 %2619 }
 0x3d1   :  { %v2742_v21 = vadd.f32 %v2710_v51, %v2620_v60 }
 0x3d3   :  { %v2617_v24 = vpop.xlane.xlu1 %2616 }
 0x3d4   :  { %2795 = vperm.xlu0 %3455, %v2742_v21   ;;  %v2741_v33 = vadd.f32 %v2709_v46, %v2617_v24 }
 0x3db   :  { %2765 = vperm.xlu1 %3456, %v2732_v45  }
 0x3e3   :  { %2774 = vperm.xlu1 %3456, %v2735_v61  }
 0x3eb   :  { %2783 = vperm.xlu1 %3456, %v2738_v49  }
 0x3f3   :  { %2792 = vperm.xlu1 %3456, %v2741_v33  }
 0x3fb   :  { %v2596_v58 = vpop.xlane.xlu0 %2595 }
 0x3fc   :  { %v2734_v47 = vadd.f32 %v2702_v36, %v2596_v58 }
 0x3fe   :  { %2771 = vperm.xlu2 %3454, %v2734_v47  }
 0x403   :  { %v2605_v57 = vpop.xlane.xlu0 %2604 }
 0x404   :  { %v2737_v17 = vadd.f32 %v2705_v7, %v2605_v57 }
 0x406   :  { %2780 = vperm.xlu2 %3454, %v2737_v17  }
 0x40b   :  { %v2614_v62 = vpop.xlane.xlu0 %2613 }
 0x40c   :  { %v2740_v27 = vadd.f32 %v2708_v48, %v2614_v62 }
 0x40e   :  { %2789 = vperm.xlu2 %3454, %v2740_v27  }
 0x413   :  { %v2623_v42 = vpop.xlane.xlu0 %2622 }
 0x414   :  { %v2743_v56 = vadd.f32 %v2711_v55, %v2623_v42 }
 0x416   :  { %2798 = vperm.xlu2 %3454, %v2743_v56  }
 0x41b   :  { %v2632_v4 = vpop.xlane.xlu0 %2631 }
 0x41c   :  { %v2746_v44 = vadd.f32 %v2714_v29, %v2632_v4 }
 0x41e   :  { %v2629_v22 = vpop.xlane.xlu2 %2628  ;;  %2807 = vperm.xlu2 %3454, %v2746_v44  }
 0x41f   :  { %v2745_v1 = vadd.f32 %v2713_v31, %v2629_v22 }
 0x421   :  { %2804 = vperm.xlu0 %3455, %v2745_v1  }
 0x42d   :  { %v2626_v30 = vpop.xlane.xlu1 %2625 }
 0x42e   :  { %v2744_v13 = vadd.f32 %v2712_v20, %v2626_v30  ;;  %v2769_v39 = vpop.permute.xlu0 %2768 }
 0x42f   :  { %v2815_v35 = vperm.slane %v2769_v39, %v2813_v8 }
 0x430   :  { %2801 = vperm.xlu1 %3456, %v2744_v13  }
 0x435   :  { %v2635_v11 = vpop.xlane.xlu1 %2634 }
 0x436   :  { %v2747_v38 = vadd.f32 %v2715_v52, %v2635_v11  ;;  %v2778_v16 = vpop.permute.xlu0 %2777 }
 0x437   :  { %v2818_v34 = vperm.slane %v2778_v16, %v2813_v8 }
 0x438   :  { %2810 = vperm.xlu1 %3456, %v2747_v38  }
 0x43e   :  { %v2787_v0 = vpop.permute.xlu0 %2786 }
 0x43f   :  { %v2821_v26 = vperm.slane %v2787_v0, %v2813_v8 }
 0x446   :  { %v2796_v60 = vpop.permute.xlu0 %2795 }
 0x447   :  { %v2824_v45 = vperm.slane %v2796_v60, %v2813_v8 }
 0x44d   :  { %v2766_v54 = vpop.permute.xlu1 %2765 }
 0x44e   :  { %v2814_v28 = vperm.slane %v2766_v54, %v2813_v8 }
 0x450   :  { %v2831_v23 = vsel %vm2830_vm2, %v2815_v35, %v2814_v28 }
 0x455   :  { %v2775_v43 = vpop.permute.xlu1 %2774 }
 0x456   :  { %v2817_v6 = vperm.slane %v2775_v43, %v2813_v8 }
 0x458   :  { %v2772_v53 = vpop.permute.xlu2 %2771 }
 0x459   :  { %v2816_v5 = vperm.slane %v2772_v53, %v2813_v8 }
 0x45b   :  { %v2833_v3 = vsel %vm2832_vm14, %v2816_v5, %v2831_v23 }
 0x45c   :  { %v2835_v50 = vsel %vm2834_vm15, %v2817_v6, %v2833_v3 }
 0x45d   :  { %v2784_v10 = vpop.permute.xlu1 %2783  ;;  %v2837_v59 = vsel %vm2836_vm0, %v2818_v34, %v2835_v50 }
 0x45e   :  { %v2820_v9 = vperm.slane %v2784_v10, %v2813_v8 }
 0x460   :  { %v2781_v14 = vpop.permute.xlu2 %2780 }
 0x461   :  { %v2819_v18 = vperm.slane %v2781_v14, %v2813_v8 }
 0x463   :  { %v2839_v63 = vsel %vm2838_vm1, %v2819_v18, %v2837_v59 }
 0x464   :  { %v2841_v2 = vsel %vm2840_vm3, %v2820_v9, %v2839_v63 }
 0x465   :  { %v2843_v12 = vsel %vm2842_vm4, %v2821_v26, %v2841_v2  ;;  %v2793_v51 = vpop.permute.xlu1 %2792 }
 0x466   :  { %2854 = vst.msk [vmem:[%s5063_s4] sm:$0xff] %vm2853_vm5, %v2843_v12  ;;  %v2823_v32 = vperm.slane %v2793_v51, %v2813_v8 }
 0x468   :  { %v2790_v21 = vpop.permute.xlu2 %2789 }
 0x469   :  { %v2822_v37 = vperm.slane %v2790_v21, %v2813_v8 }
 0x46b   :  { %v2844_v25 = vsel %vm2830_vm2, %v2823_v32, %v2822_v37 }
 0x46c   :  { %v2845_v41 = vsel %vm2832_vm14, %v2824_v45, %v2844_v25 }
 0x470   :  { %v2799_v61 = vpop.permute.xlu2 %2798 }
 0x471   :  { %v2825_v19 = vperm.slane %v2799_v61, %v2813_v8 }
 0x473   :  { %v2846_v40 = vsel %vm2834_vm15, %v2825_v19, %v2845_v41 }
 0x478   :  { %v2808_v36 = vpop.permute.xlu2 %2807 }
 0x479   :  { %v2828_v7 = vperm.slane %v2808_v36, %v2813_v8 }
 0x493   :  { %v2805_v46 = vpop.permute.xlu0 %2804 }
 0x494   :  { %v2827_v58 = vperm.slane %v2805_v46, %v2813_v8 }
 0x4a2   :  { %v2802_v49 = vpop.permute.xlu1 %2801 }
 0x4a3   :  { %v2826_v24 = vperm.slane %v2802_v49, %v2813_v8 }
 0x4a5   :  { %v2847_v33 = vsel %vm2836_vm0, %v2826_v24, %v2846_v40 }
 0x4a6   :  { %v2848_v47 = vsel %vm2838_vm1, %v2827_v58, %v2847_v33 }
 0x4a7   :  { %v2849_v48 = vsel %vm2840_vm3, %v2828_v7, %v2848_v47 }
 0x4aa   :  { %v2811_v57 = vpop.permute.xlu1 %2810 }
 0x4ab   :  { %v2829_v17 = vperm.slane %v2811_v57, %v2813_v8 }
 0x4ad   :  { %v2850_v62 = vsel %vm2842_vm4, %v2829_v17, %v2849_v48 }
 0x4ae   :  { %2855 = vst.msk [vmem:[%s5063_s4 + $0x8] sm:$0xff] %vm2853_vm5, %v2850_v62 }

</bundles_post_ra>
